<compile_context>
chip_gen: v6e
topology: v6e:2x2x1
jax: 0.10.0
libtpu: 0.0.40
codegen_flags: <defaults>
</compile_context>

<pallas_src>
import functools
import math

import jax
import jax.numpy as jnp
import numpy as np
from jax import lax
from jax.experimental import pallas as pl
from jax.experimental.pallas import tpu as pltpu

CH = 320            # conv_in output channels (from the module definition)
CHP = 384           # CH zero-padded to 3*128 for MXU / lane alignment
CROSS_DIM = 768     # segmind/tiny-sd cross_attention_dim
TEXT_DIM = 512      # CLIP text-feature dim
FEAT = TEXT_DIM + CH        # concatenated [text_features, timestep sin/cos emb]
FEATP = 896                 # FEAT zero-padded to 7*128


# ----------------------------------------------------------------------------
# Fused kernel: one image per grid step.
#   img_ref   : (1, 1, HW)   f32   flat image, pixels lane-dense
#   feat_ref  : (1, 1, FEATP) bf16 [text_features, timestep emb, 0-pad]
#   w_in_ref  : (CHP, 9)     bf16  conv_in weight  [channel, tap]
#   w_out_ref : (9, CHP)     bf16  conv_out weight [tap, channel]
#   wc_ref    : (FEATP, 9)   bf16  fused conditioning->tap weight (through conv_out)
#   bc_ref    : (1, 9)       f32   fused conditioning->tap constant
#   masks_ref : (9, HW)      f32   per-tap validity masks (zero padding)
#   bout_ref  : (1,)         f32   conv_out bias (SMEM scalar)
#   o_ref     : (1, 1, HW)   f32   lane-dense output sample
#   patch_ref : (9, HW)      f32   VMEM scratch for the in-kernel im2col
# ----------------------------------------------------------------------------
def _fused_unet_kernel(img_ref, feat_ref, w_in_ref, w_out_ref, wc_ref, bc_ref,
                       masks_ref, bout_ref, o_ref, patch_ref, *, H, W):
    HW = H * W
    # static per-tap lane shifts implementing the (dy-1, dx-1) spatial offsets:
    # rolled[p] = x[(p + (dy-1)*W + (dx-1)) mod HW]; masks kill the wrap-around.
    shifts = [(-((dy - 1) * W + (dx - 1))) % HW
              for dy in range(3) for dx in range(3)]

    masks = masks_ref[...]                                    # (9, HW) f32 0/1
    x = img_ref[0]                                            # (1, HW) f32

    # ---- in-kernel im2col: 9 masked lane-rolls of the flat image row -------
    for ti in range(9):
        r = x if shifts[ti] == 0 else pltpu.roll(x, shift=shifts[ti], axis=1)
        patch_ref[ti:ti + 1, :] = r * masks[ti:ti + 1, :]
    patches = patch_ref[...].astype(jnp.bfloat16)             # (9, HW)

    # ---- conv_in -> conv_out channel contraction, 128-channel chunks -------
    # (keeps the live f32 intermediate at (128, HW) = 32 vregs, no spill)
    t = jnp.zeros((9, HW), jnp.float32)
    for blk in range(CHP // 128):
        w_in_blk = w_in_ref[pl.ds(blk * 128, 128), :]         # (128, 9) bf16
        h_blk = jnp.dot(w_in_blk, patches,
                        preferred_element_type=jnp.float32)    # (128, HW) f32
        w_out_blk = w_out_ref[:, pl.ds(blk * 128, 128)]       # (9, 128) bf16
        t = t + jnp.dot(w_out_blk, h_blk.astype(jnp.bfloat16),
                        preferred_element_type=jnp.float32)    # (9, HW) f32

    # ---- per-image conditioning bias, pre-folded through conv_out ----------
    # c[tap] = w_out[tap,:] . (text proj + seq-1 cross-attn + timestep MLP
    #                          + conv_in bias)   ==  feat @ Wc + bc
    c = jnp.dot(feat_ref[0], wc_ref[...],
                preferred_element_type=jnp.float32) + bc_ref[...]     # (1, 9)
    cmap = jnp.dot(c, masks, preferred_element_type=jnp.float32)      # (1, HW)

    # ---- conv_out spatial shift-and-sum: single-row rolls + static masks ---
    acc = cmap + bout_ref[0]
    for ti in range(9):
        row = t[ti:ti + 1, :]                                  # (1, HW)
        r = row if shifts[ti] == 0 else pltpu.roll(row, shift=shifts[ti], axis=1)
        acc = acc + masks[ti:ti + 1, :] * r
    o_ref[0] = acc


# ----------------------------------------------------------------------------
# Trace-time helpers (plain JAX / numpy).
# ----------------------------------------------------------------------------
def timestep_embedding(t, dim):
    half = dim // 2
    freqs = jnp.exp(-math.log(10000.0)
                    * jnp.arange(half, dtype=jnp.float32) / half)
    args = t.astype(jnp.float32)[:, None] * freqs[None, :]
    return jnp.concatenate([jnp.sin(args), jnp.cos(args)], axis=-1)


def _conv_masks(H, W):
    """(9, H*W) 0/1 validity masks for a 3x3 conv with zero padding 1."""
    yy, xx = np.meshgrid(np.arange(H), np.arange(W), indexing="ij")
    yy, xx = yy.reshape(-1), xx.reshape(-1)
    masks = np.zeros((9, H * W), np.float32)
    for dy in range(3):
        for dx in range(3):
            oy, ox = dy - 1, dx - 1
            masks[dy * 3 + dx] = ((yy + oy >= 0) & (yy + oy < H)
                                  & (xx + ox >= 0) & (xx + ox < W))
    return masks


def _pad_to(a, axis, size):
    pads = [(0, 0)] * a.ndim
    pads[axis] = (0, size - a.shape[axis])
    return jnp.pad(a, pads)


def init_params(key):
    """f32 'module-like' parameters (used by the pure-JAX reference)."""
    ks = jax.random.split(key, 10)
    s = 0.02
    return {
        "text_w": jax.random.normal(ks[0], (TEXT_DIM, CROSS_DIM), jnp.float32) * s,
        "text_b": jax.random.normal(ks[1], (CROSS_DIM,), jnp.float32) * s,
        "conv_in_w": jax.random.normal(ks[2], (CH, 1, 3, 3), jnp.float32) * s,
        "conv_in_b": jax.random.normal(ks[3], (CH,), jnp.float32) * s,
        "conv_out_w": jax.random.normal(ks[4], (1, CH, 3, 3), jnp.float32) * s,
        "conv_out_b": jax.random.normal(ks[5], (1,), jnp.float32) * s,
        "time_w": jax.random.normal(ks[6], (CH, CH), jnp.float32) * s,
        "time_b": jax.random.normal(ks[7], (CH,), jnp.float32) * s,
        "wv": jax.random.normal(ks[8], (CROSS_DIM, CH), jnp.float32) * s,
        "wo": jax.random.normal(ks[9], (CH, CH), jnp.float32) * s,
        # wq / wk of the stand-in cross-attention are mathematically dead for a
        # length-1 key sequence (softmax over one key == 1), so not materialized.
    }


def prepare_kernel_params(p):
    """Fold the conditioning path through conv_out and lay weights out for TPU."""
    w_in = p["conv_in_w"].reshape(CH, 9)                 # [channel, tap]
    w_out = p["conv_out_w"][0].reshape(CH, 9).T          # [tap, channel] (9, CH)

    # per-image channel bias: b_i = text_i @ (text_w wv wo) + tsin_i @ time_w + b_const
    w_text_ch = p["text_w"] @ p["wv"] @ p["wo"]          # (512, CH)
    b_const = p["text_b"] @ p["wv"] @ p["wo"] + p["time_b"] + p["conv_in_b"]

    # fold through the linear conv_out channel contraction: c_i = feat_i @ Wc + bc
    wc = jnp.concatenate([w_text_ch @ w_out.T,           # (512, 9)
                          p["time_w"] @ w_out.T], axis=0)  # (320, 9)
    wc = _pad_to(wc, 0, FEATP)                            # (FEATP, 9)
    bc = (b_const @ w_out.T).reshape(1, 9)

    return {
        "w_in": _pad_to(w_in, 0, CHP).astype(jnp.bfloat16),     # (CHP, 9)
        "w_out": _pad_to(w_out, 1, CHP).astype(jnp.bfloat16),   # (9, CHP)
        "wc": wc.astype(jnp.bfloat16),                          # (FEATP, 9)
        "bc": bc.astype(jnp.float32),                           # (1, 9)
        "b_out": p["conv_out_b"].reshape(1).astype(jnp.float32),  # SMEM scalar
    }


@jax.jit
def pretrained_diffusion_forward(kparams, img_nchw, timestep, text_features):
    """img_nchw: (B,1,H,W) f32, timestep: (B,) f32, text_features: (B,512) f32.
    Returns sample (B,1,H,W) f32 (matches UNet2DConditionModel .sample layout)."""
    B, _, H, W = img_nchw.shape
    HW = H * W                      # lane-dense spatial axis (256 = 2x128 here)

    tsin = timestep_embedding(
        jnp.broadcast_to(jnp.atleast_1d(timestep), (B,)), CH)
    feat = jnp.concatenate([text_features, tsin], axis=-1)       # (B, FEAT)
    feat = _pad_to(feat, 1, FEATP).astype(jnp.bfloat16).reshape(B, 1, FEATP)

    img = img_nchw.reshape(B, 1, HW)
    masks = jnp.asarray(_conv_masks(H, W))                       # trace-time const

    out = pl.pallas_call(
        functools.partial(_fused_unet_kernel, H=H, W=W),
        out_shape=jax.ShapeDtypeStruct((B, 1, HW), jnp.float32),
        grid=(B,),
        in_specs=[
            pl.BlockSpec((1, 1, HW), lambda i: (i, 0, 0)),       # image
            pl.BlockSpec((1, 1, FEATP), lambda i: (i, 0, 0)),    # conditioning
            pl.BlockSpec((CHP, 9), lambda i: (0, 0)),            # conv_in W
            pl.BlockSpec((9, CHP), lambda i: (0, 0)),            # conv_out W
            pl.BlockSpec((FEATP, 9), lambda i: (0, 0)),          # fused bias W
            pl.BlockSpec((1, 9), lambda i: (0, 0)),              # fused bias b
            pl.BlockSpec((9, HW), lambda i: (0, 0)),             # tap masks
            pl.BlockSpec(memory_space=pltpu.MemorySpace.SMEM),   # conv_out bias
        ],
        out_specs=pl.BlockSpec((1, 1, HW), lambda i: (i, 0, 0)),
        scratch_shapes=[pltpu.VMEM((9, HW), jnp.float32)],
        compiler_params=pltpu.CompilerParams(
            dimension_semantics=("parallel",)),
    )(img, feat, kparams["w_in"], kparams["w_out"], kparams["wc"],
      kparams["bc"], masks, kparams["b_out"])

    return out.reshape(B, 1, H, W)


# ----------------------------------------------------------------------------
# Pure-JAX reference of the same stand-in model (unfused, f32) for verification.
# ----------------------------------------------------------------------------
def reference_forward(params, img_nchw, timestep, text_features):
    B = img_nchw.shape[0]
    tsin = timestep_embedding(
        jnp.broadcast_to(jnp.atleast_1d(timestep), (B,)), CH)
    ctx = text_features @ params["text_w"] + params["text_b"]       # (B, 768)
    # cross-attention with a single key: softmax over one key == 1 -> attn == V
    attn = (ctx @ params["wv"]) @ params["wo"]                      # (B, CH)
    temb = tsin @ params["time_w"] + params["time_b"]               # (B, CH)

    dn = ("NCHW", "OIHW", "NCHW")
    h = lax.conv_general_dilated(img_nchw, params["conv_in_w"], (1, 1), "SAME",
                                 dimension_numbers=dn)
    h = h + params["conv_in_b"][None, :, None, None]
    h = h + (attn + temb)[:, :, None, None]
    out = lax.conv_general_dilated(h, params["conv_out_w"], (1, 1), "SAME",
                                   dimension_numbers=dn)
    return out + params["conv_out_b"][None, :, None, None]


if __name__ == "__main__":
    key = jax.random.PRNGKey(0)
    k_params, k_img, k_txt = jax.random.split(key, 3)

    B, H, W = 2, 16, 16
    params = init_params(k_params)
    kparams = prepare_kernel_params(params)

    img = jax.random.normal(k_img, (B, 1, H, W), jnp.float32)
    timestep = jnp.array([10.0, 500.0], jnp.float32)
    # TODO(synk): class_labels -> CLIP text features cannot be run here; synthesize.
    class_labels = ["a cat", "a dog"]  # noqa: F841  (only determines the batch)
    text_features = jax.random.normal(k_txt, (B, TEXT_DIM), jnp.float32)

    sample = pretrained_diffusion_forward(params=None or kparams,
                                          img_nchw=img, timestep=timestep,
                                          text_features=text_features) \
        if False else pretrained_diffusion_forward(kparams, img, timestep,
                                                   text_features)
    jax.block_until_ready(sample)

    assert sample.shape == (B, 1, H, W), sample.shape
    assert sample.dtype == jnp.float32
    assert bool(jnp.all(jnp.isfinite(sample)))

    ref = reference_forward(params, img, timestep, text_features)
    err = float(jnp.max(jnp.abs(sample - ref)))
    assert err < 3e-2, f"max abs error vs f32 reference: {err}"
    print("KERNEL_OK")
</pallas_src>

<mosaic_0001>
module attributes {stable_mosaic.version = 11 : i64} {
  func.func @_fused_unet_kernel(%arg0: i32, %arg1: memref<1x1x256xf32, #tpu.memory_space<vmem>>, %arg2: memref<1x1x896xbf16, #tpu.memory_space<vmem>>, %arg3: memref<384x9xbf16, #tpu.memory_space<vmem>>, %arg4: memref<9x384xbf16, #tpu.memory_space<vmem>>, %arg5: memref<896x9xbf16, #tpu.memory_space<vmem>>, %arg6: memref<1x9xf32, #tpu.memory_space<vmem>>, %arg7: memref<9x256xf32, #tpu.memory_space<vmem>>, %arg8: memref<1xf32, #tpu.memory_space<smem>>, %arg9: memref<1x1x256xf32, #tpu.memory_space<vmem>>, %arg10: memref<9x256xf32, #tpu.memory_space<vmem>>) attributes {dimension_semantics = [#tpu.dimension_semantics<parallel>], iteration_bounds = array<i64: 2>, scalar_prefetch = 0 : i64, scratch_operands = 1 : i64, tpu.core_type = #tpu.core_type<tc>, window_params = [{transform_indices = @transform_0, window_bounds = array<i64: 1, 1, 256>}, {transform_indices = @transform_1, window_bounds = array<i64: 1, 1, 896>}, {pipeline_mode = #tpu.pipeline_mode<synchronous>, transform_indices = @transform_2, window_bounds = array<i64: 384, 9>}, {pipeline_mode = #tpu.pipeline_mode<synchronous>, transform_indices = @transform_3, window_bounds = array<i64: 9, 384>}, {pipeline_mode = #tpu.pipeline_mode<synchronous>, transform_indices = @transform_4, window_bounds = array<i64: 896, 9>}, {pipeline_mode = #tpu.pipeline_mode<synchronous>, transform_indices = @transform_5, window_bounds = array<i64: 1, 9>}, {pipeline_mode = #tpu.pipeline_mode<synchronous>, transform_indices = @transform_6, window_bounds = array<i64: 9, 256>}, {transform_indices = @transform_7, window_bounds = array<i64: 1>}, {transform_indices = @transform_8, window_bounds = array<i64: 1, 1, 256>}]} {
    %c0 = arith.constant 0 : index
    %c0_0 = arith.constant 0 : index
    %0 = vector.load %arg7[%c0, %c0_0] : memref<9x256xf32, #tpu.memory_space<vmem>>, vector<9x256xf32>
    %c0_1 = arith.constant 0 : index
    %c0_2 = arith.constant 0 : index
    %c0_3 = arith.constant 0 : index
    %1 = vector.load %arg1[%c0_1, %c0_2, %c0_3] : memref<1x1x256xf32, #tpu.memory_space<vmem>>, vector<1x1x256xf32>
    %2 = vector.shape_cast %1 : vector<1x1x256xf32> to vector<1x256xf32>
    %c17_i32 = arith.constant 17 : i32
    %3 = tpu.dynamic_rotate %2 by %c17_i32 dim 1 : vector<1x256xf32>, i32 -> vector<1x256xf32>
    %4 = vector.extract_strided_slice %0 {offsets = [0, 0], sizes = [1, 256], strides = [1, 1]} : vector<9x256xf32> to vector<1x256xf32>
    %5 = arith.mulf %3, %4 : vector<1x256xf32>
    %c0_4 = arith.constant 0 : index
    %c0_5 = arith.constant 0 : index
    %6 = vector.load %arg10[%c0_4, %c0_5] : memref<9x256xf32, #tpu.memory_space<vmem>>, vector<1x256xf32>
    tpu.vector_store %arg10[%c0_4, %c0_5], %5 {strides = array<i32>} : memref<9x256xf32, #tpu.memory_space<vmem>>, vector<1x256xf32>,
    %c16_i32 = arith.constant 16 : i32
    %7 = tpu.dynamic_rotate %2 by %c16_i32 dim 1 : vector<1x256xf32>, i32 -> vector<1x256xf32>
    %8 = vector.extract_strided_slice %0 {offsets = [1, 0], sizes = [1, 256], strides = [1, 1]} : vector<9x256xf32> to vector<1x256xf32>
    %9 = arith.mulf %7, %8 : vector<1x256xf32>
    %c1 = arith.constant 1 : index
    %c0_6 = arith.constant 0 : index
    %10 = vector.load %arg10[%c1, %c0_6] : memref<9x256xf32, #tpu.memory_space<vmem>>, vector<1x256xf32>
    tpu.vector_store %arg10[%c1, %c0_6], %9 {strides = array<i32>} : memref<9x256xf32, #tpu.memory_space<vmem>>, vector<1x256xf32>,
    %c15_i32 = arith.constant 15 : i32
    %11 = tpu.dynamic_rotate %2 by %c15_i32 dim 1 : vector<1x256xf32>, i32 -> vector<1x256xf32>
    %12 = vector.extract_strided_slice %0 {offsets = [2, 0], sizes = [1, 256], strides = [1, 1]} : vector<9x256xf32> to vector<1x256xf32>
    %13 = arith.mulf %11, %12 : vector<1x256xf32>
    %c2 = arith.constant 2 : index
    %c0_7 = arith.constant 0 : index
    %14 = vector.load %arg10[%c2, %c0_7] : memref<9x256xf32, #tpu.memory_space<vmem>>, vector<1x256xf32>
    tpu.vector_store %arg10[%c2, %c0_7], %13 {strides = array<i32>} : memref<9x256xf32, #tpu.memory_space<vmem>>, vector<1x256xf32>,
    %c1_i32 = arith.constant 1 : i32
    %15 = tpu.dynamic_rotate %2 by %c1_i32 dim 1 : vector<1x256xf32>, i32 -> vector<1x256xf32>
    %16 = vector.extract_strided_slice %0 {offsets = [3, 0], sizes = [1, 256], strides = [1, 1]} : vector<9x256xf32> to vector<1x256xf32>
    %17 = arith.mulf %15, %16 : vector<1x256xf32>
    %c3 = arith.constant 3 : index
    %c0_8 = arith.constant 0 : index
    %18 = vector.load %arg10[%c3, %c0_8] : memref<9x256xf32, #tpu.memory_space<vmem>>, vector<1x256xf32>
    tpu.vector_store %arg10[%c3, %c0_8], %17 {strides = array<i32>} : memref<9x256xf32, #tpu.memory_space<vmem>>, vector<1x256xf32>,
    %19 = vector.extract_strided_slice %0 {offsets = [4, 0], sizes = [1, 256], strides = [1, 1]} : vector<9x256xf32> to vector<1x256xf32>
    %20 = arith.mulf %2, %19 : vector<1x256xf32>
    %c4 = arith.constant 4 : index
    %c0_9 = arith.constant 0 : index
    %21 = vector.load %arg10[%c4, %c0_9] : memref<9x256xf32, #tpu.memory_space<vmem>>, vector<1x256xf32>
    tpu.vector_store %arg10[%c4, %c0_9], %20 {strides = array<i32>} : memref<9x256xf32, #tpu.memory_space<vmem>>, vector<1x256xf32>,
    %c255_i32 = arith.constant 255 : i32
    %22 = tpu.dynamic_rotate %2 by %c255_i32 dim 1 : vector<1x256xf32>, i32 -> vector<1x256xf32>
    %23 = vector.extract_strided_slice %0 {offsets = [5, 0], sizes = [1, 256], strides = [1, 1]} : vector<9x256xf32> to vector<1x256xf32>
    %24 = arith.mulf %22, %23 : vector<1x256xf32>
    %c5 = arith.constant 5 : index
    %c0_10 = arith.constant 0 : index
    %25 = vector.load %arg10[%c5, %c0_10] : memref<9x256xf32, #tpu.memory_space<vmem>>, vector<1x256xf32>
    tpu.vector_store %arg10[%c5, %c0_10], %24 {strides = array<i32>} : memref<9x256xf32, #tpu.memory_space<vmem>>, vector<1x256xf32>,
    %c241_i32 = arith.constant 241 : i32
    %26 = tpu.dynamic_rotate %2 by %c241_i32 dim 1 : vector<1x256xf32>, i32 -> vector<1x256xf32>
    %27 = vector.extract_strided_slice %0 {offsets = [6, 0], sizes = [1, 256], strides = [1, 1]} : vector<9x256xf32> to vector<1x256xf32>
    %28 = arith.mulf %26, %27 : vector<1x256xf32>
    %c6 = arith.constant 6 : index
    %c0_11 = arith.constant 0 : index
    %29 = vector.load %arg10[%c6, %c0_11] : memref<9x256xf32, #tpu.memory_space<vmem>>, vector<1x256xf32>
    tpu.vector_store %arg10[%c6, %c0_11], %28 {strides = array<i32>} : memref<9x256xf32, #tpu.memory_space<vmem>>, vector<1x256xf32>,
    %c240_i32 = arith.constant 240 : i32
    %30 = tpu.dynamic_rotate %2 by %c240_i32 dim 1 : vector<1x256xf32>, i32 -> vector<1x256xf32>
    %31 = vector.extract_strided_slice %0 {offsets = [7, 0], sizes = [1, 256], strides = [1, 1]} : vector<9x256xf32> to vector<1x256xf32>
    %32 = arith.mulf %30, %31 : vector<1x256xf32>
    %c7 = arith.constant 7 : index
    %c0_12 = arith.constant 0 : index
    %33 = vector.load %arg10[%c7, %c0_12] : memref<9x256xf32, #tpu.memory_space<vmem>>, vector<1x256xf32>
    tpu.vector_store %arg10[%c7, %c0_12], %32 {strides = array<i32>} : memref<9x256xf32, #tpu.memory_space<vmem>>, vector<1x256xf32>,
    %c239_i32 = arith.constant 239 : i32
    %34 = tpu.dynamic_rotate %2 by %c239_i32 dim 1 : vector<1x256xf32>, i32 -> vector<1x256xf32>
    %35 = vector.extract_strided_slice %0 {offsets = [8, 0], sizes = [1, 256], strides = [1, 1]} : vector<9x256xf32> to vector<1x256xf32>
    %36 = arith.mulf %34, %35 : vector<1x256xf32>
    %c8 = arith.constant 8 : index
    %c0_13 = arith.constant 0 : index
    %37 = vector.load %arg10[%c8, %c0_13] : memref<9x256xf32, #tpu.memory_space<vmem>>, vector<1x256xf32>
    tpu.vector_store %arg10[%c8, %c0_13], %36 {strides = array<i32>} : memref<9x256xf32, #tpu.memory_space<vmem>>, vector<1x256xf32>,
    %c0_14 = arith.constant 0 : index
    %c0_15 = arith.constant 0 : index
    %38 = vector.load %arg10[%c0_14, %c0_15] : memref<9x256xf32, #tpu.memory_space<vmem>>, vector<9x256xf32>
    %39 = arith.truncf %38 : vector<9x256xf32> to vector<9x256xbf16>
    %cst = arith.constant 0.000000e+00 : f32
    %40 = vector.broadcast %cst : f32 to vector<9x256xf32>
    %c0_16 = arith.constant 0 : index
    %c0_17 = arith.constant 0 : index
    %41 = vector.load %arg3[%c0_16, %c0_17] : memref<384x9xbf16, #tpu.memory_space<vmem>>, vector<128x9xbf16>
    %cst_18 = arith.constant dense<0.000000e+00> : vector<128x256xf32>
    %42 = tpu.matmul %41, %39, %cst_18 {dimension_numbers = #tpu.dot_dimension_numbers<[1], [0], [0], [1], [0, 0, 1, 1], [], []>} : vector<128x9xbf16>, vector<9x256xbf16>, vector<128x256xf32> -> vector<128x256xf32>
    %c0_19 = arith.constant 0 : index
    %c0_20 = arith.constant 0 : index
    %43 = vector.load %arg4[%c0_19, %c0_20] : memref<9x384xbf16, #tpu.memory_space<vmem>>, vector<9x128xbf16>
    %44 = arith.truncf %42 : vector<128x256xf32> to vector<128x256xbf16>
    %cst_21 = arith.constant dense<0.000000e+00> : vector<9x256xf32>
    %45 = tpu.matmul %43, %44, %cst_21 {dimension_numbers = #tpu.dot_dimension_numbers<[1], [0], [0], [1], [0, 0, 1, 1], [], []>} : vector<9x128xbf16>, vector<128x256xbf16>, vector<9x256xf32> -> vector<9x256xf32>
    %46 = arith.addf %40, %45 : vector<9x256xf32>
    %c128 = arith.constant 128 : index
    %c0_22 = arith.constant 0 : index
    %47 = vector.load %arg3[%c128, %c0_22] : memref<384x9xbf16, #tpu.memory_space<vmem>>, vector<128x9xbf16>
    %cst_23 = arith.constant dense<0.000000e+00> : vector<128x256xf32>
    %48 = tpu.matmul %47, %39, %cst_23 {dimension_numbers = #tpu.dot_dimension_numbers<[1], [0], [0], [1], [0, 0, 1, 1], [], []>} : vector<128x9xbf16>, vector<9x256xbf16>, vector<128x256xf32> -> vector<128x256xf32>
    %c0_24 = arith.constant 0 : index
    %c128_25 = arith.constant 128 : index
    %49 = vector.load %arg4[%c0_24, %c128_25] : memref<9x384xbf16, #tpu.memory_space<vmem>>, vector<9x128xbf16>
    %50 = arith.truncf %48 : vector<128x256xf32> to vector<128x256xbf16>
    %cst_26 = arith.constant dense<0.000000e+00> : vector<9x256xf32>
    %51 = tpu.matmul %49, %50, %cst_26 {dimension_numbers = #tpu.dot_dimension_numbers<[1], [0], [0], [1], [0, 0, 1, 1], [], []>} : vector<9x128xbf16>, vector<128x256xbf16>, vector<9x256xf32> -> vector<9x256xf32>
    %52 = arith.addf %46, %51 : vector<9x256xf32>
    %c256 = arith.constant 256 : index
    %c0_27 = arith.constant 0 : index
    %53 = vector.load %arg3[%c256, %c0_27] : memref<384x9xbf16, #tpu.memory_space<vmem>>, vector<128x9xbf16>
    %cst_28 = arith.constant dense<0.000000e+00> : vector<128x256xf32>
    %54 = tpu.matmul %53, %39, %cst_28 {dimension_numbers = #tpu.dot_dimension_numbers<[1], [0], [0], [1], [0, 0, 1, 1], [], []>} : vector<128x9xbf16>, vector<9x256xbf16>, vector<128x256xf32> -> vector<128x256xf32>
    %c0_29 = arith.constant 0 : index
    %c256_30 = arith.constant 256 : index
    %55 = vector.load %arg4[%c0_29, %c256_30] : memref<9x384xbf16, #tpu.memory_space<vmem>>, vector<9x128xbf16>
    %56 = arith.truncf %54 : vector<128x256xf32> to vector<128x256xbf16>
    %cst_31 = arith.constant dense<0.000000e+00> : vector<9x256xf32>
    %57 = tpu.matmul %55, %56, %cst_31 {dimension_numbers = #tpu.dot_dimension_numbers<[1], [0], [0], [1], [0, 0, 1, 1], [], []>} : vector<9x128xbf16>, vector<128x256xbf16>, vector<9x256xf32> -> vector<9x256xf32>
    %58 = arith.addf %52, %57 : vector<9x256xf32>
    %c0_32 = arith.constant 0 : index
    %c0_33 = arith.constant 0 : index
    %c0_34 = arith.constant 0 : index
    %59 = vector.load %arg2[%c0_32, %c0_33, %c0_34] : memref<1x1x896xbf16, #tpu.memory_space<vmem>>, vector<1x1x896xbf16>
    %60 = vector.shape_cast %59 : vector<1x1x896xbf16> to vector<1x896xbf16>
    %c0_35 = arith.constant 0 : index
    %c0_36 = arith.constant 0 : index
    %61 = vector.load %arg5[%c0_35, %c0_36] : memref<896x9xbf16, #tpu.memory_space<vmem>>, vector<896x9xbf16>
    %cst_37 = arith.constant dense<0.000000e+00> : vector<1x9xf32>
    %62 = tpu.matmul %60, %61, %cst_37 {dimension_numbers = #tpu.dot_dimension_numbers<[1], [0], [0], [1], [0, 0, 1, 1], [], []>} : vector<1x896xbf16>, vector<896x9xbf16>, vector<1x9xf32> -> vector<1x9xf32>
    %c0_38 = arith.constant 0 : index
    %c0_39 = arith.constant 0 : index
    %63 = vector.load %arg6[%c0_38, %c0_39] : memref<1x9xf32, #tpu.memory_space<vmem>>, vector<1x9xf32>
    %64 = arith.addf %62, %63 : vector<1x9xf32>
    %cst_40 = arith.constant dense<0.000000e+00> : vector<1x256xf32>
    %65 = tpu.matmul %64, %0, %cst_40 {dimension_numbers = #tpu.dot_dimension_numbers<[1], [0], [0], [1], [0, 0, 1, 1], [], []>} : vector<1x9xf32>, vector<9x256xf32>, vector<1x256xf32> -> vector<1x256xf32>
    %c0_41 = arith.constant 0 : index
    %66 = memref.load %arg8[%c0_41] : memref<1xf32, #tpu.memory_space<smem>>
    %67 = vector.broadcast %66 : f32 to vector<1x256xf32>
    %68 = arith.addf %65, %67 : vector<1x256xf32>
    %69 = vector.extract_strided_slice %58 {offsets = [0, 0], sizes = [1, 256], strides = [1, 1]} : vector<9x256xf32> to vector<1x256xf32>
    %c17_i32_42 = arith.constant 17 : i32
    %70 = tpu.dynamic_rotate %69 by %c17_i32_42 dim 1 : vector<1x256xf32>, i32 -> vector<1x256xf32>
    %71 = vector.extract_strided_slice %0 {offsets = [0, 0], sizes = [1, 256], strides = [1, 1]} : vector<9x256xf32> to vector<1x256xf32>
    %72 = arith.mulf %71, %70 : vector<1x256xf32>
    %73 = arith.addf %68, %72 : vector<1x256xf32>
    %74 = vector.extract_strided_slice %58 {offsets = [1, 0], sizes = [1, 256], strides = [1, 1]} : vector<9x256xf32> to vector<1x256xf32>
    %c16_i32_43 = arith.constant 16 : i32
    %75 = tpu.dynamic_rotate %74 by %c16_i32_43 dim 1 : vector<1x256xf32>, i32 -> vector<1x256xf32>
    %76 = vector.extract_strided_slice %0 {offsets = [1, 0], sizes = [1, 256], strides = [1, 1]} : vector<9x256xf32> to vector<1x256xf32>
    %77 = arith.mulf %76, %75 : vector<1x256xf32>
    %78 = arith.addf %73, %77 : vector<1x256xf32>
    %79 = vector.extract_strided_slice %58 {offsets = [2, 0], sizes = [1, 256], strides = [1, 1]} : vector<9x256xf32> to vector<1x256xf32>
    %c15_i32_44 = arith.constant 15 : i32
    %80 = tpu.dynamic_rotate %79 by %c15_i32_44 dim 1 : vector<1x256xf32>, i32 -> vector<1x256xf32>
    %81 = vector.extract_strided_slice %0 {offsets = [2, 0], sizes = [1, 256], strides = [1, 1]} : vector<9x256xf32> to vector<1x256xf32>
    %82 = arith.mulf %81, %80 : vector<1x256xf32>
    %83 = arith.addf %78, %82 : vector<1x256xf32>
    %84 = vector.extract_strided_slice %58 {offsets = [3, 0], sizes = [1, 256], strides = [1, 1]} : vector<9x256xf32> to vector<1x256xf32>
    %c1_i32_45 = arith.constant 1 : i32
    %85 = tpu.dynamic_rotate %84 by %c1_i32_45 dim 1 : vector<1x256xf32>, i32 -> vector<1x256xf32>
    %86 = vector.extract_strided_slice %0 {offsets = [3, 0], sizes = [1, 256], strides = [1, 1]} : vector<9x256xf32> to vector<1x256xf32>
    %87 = arith.mulf %86, %85 : vector<1x256xf32>
    %88 = arith.addf %83, %87 : vector<1x256xf32>
    %89 = vector.extract_strided_slice %58 {offsets = [4, 0], sizes = [1, 256], strides = [1, 1]} : vector<9x256xf32> to vector<1x256xf32>
    %90 = vector.extract_strided_slice %0 {offsets = [4, 0], sizes = [1, 256], strides = [1, 1]} : vector<9x256xf32> to vector<1x256xf32>
    %91 = arith.mulf %90, %89 : vector<1x256xf32>
    %92 = arith.addf %88, %91 : vector<1x256xf32>
    %93 = vector.extract_strided_slice %58 {offsets = [5, 0], sizes = [1, 256], strides = [1, 1]} : vector<9x256xf32> to vector<1x256xf32>
    %c255_i32_46 = arith.constant 255 : i32
    %94 = tpu.dynamic_rotate %93 by %c255_i32_46 dim 1 : vector<1x256xf32>, i32 -> vector<1x256xf32>
    %95 = vector.extract_strided_slice %0 {offsets = [5, 0], sizes = [1, 256], strides = [1, 1]} : vector<9x256xf32> to vector<1x256xf32>
    %96 = arith.mulf %95, %94 : vector<1x256xf32>
    %97 = arith.addf %92, %96 : vector<1x256xf32>
    %98 = vector.extract_strided_slice %58 {offsets = [6, 0], sizes = [1, 256], strides = [1, 1]} : vector<9x256xf32> to vector<1x256xf32>
    %c241_i32_47 = arith.constant 241 : i32
    %99 = tpu.dynamic_rotate %98 by %c241_i32_47 dim 1 : vector<1x256xf32>, i32 -> vector<1x256xf32>
    %100 = vector.extract_strided_slice %0 {offsets = [6, 0], sizes = [1, 256], strides = [1, 1]} : vector<9x256xf32> to vector<1x256xf32>
    %101 = arith.mulf %100, %99 : vector<1x256xf32>
    %102 = arith.addf %97, %101 : vector<1x256xf32>
    %103 = vector.extract_strided_slice %58 {offsets = [7, 0], sizes = [1, 256], strides = [1, 1]} : vector<9x256xf32> to vector<1x256xf32>
    %c240_i32_48 = arith.constant 240 : i32
    %104 = tpu.dynamic_rotate %103 by %c240_i32_48 dim 1 : vector<1x256xf32>, i32 -> vector<1x256xf32>
    %105 = vector.extract_strided_slice %0 {offsets = [7, 0], sizes = [1, 256], strides = [1, 1]} : vector<9x256xf32> to vector<1x256xf32>
    %106 = arith.mulf %105, %104 : vector<1x256xf32>
    %107 = arith.addf %102, %106 : vector<1x256xf32>
    %108 = vector.extract_strided_slice %58 {offsets = [8, 0], sizes = [1, 256], strides = [1, 1]} : vector<9x256xf32> to vector<1x256xf32>
    %c239_i32_49 = arith.constant 239 : i32
    %109 = tpu.dynamic_rotate %108 by %c239_i32_49 dim 1 : vector<1x256xf32>, i32 -> vector<1x256xf32>
    %110 = vector.extract_strided_slice %0 {offsets = [8, 0], sizes = [1, 256], strides = [1, 1]} : vector<9x256xf32> to vector<1x256xf32>
    %111 = arith.mulf %110, %109 : vector<1x256xf32>
    %112 = arith.addf %107, %111 : vector<1x256xf32>
    %c0_50 = arith.constant 0 : index
    %c0_51 = arith.constant 0 : index
    %c0_52 = arith.constant 0 : index
    %113 = vector.load %arg9[%c0_50, %c0_51, %c0_52] : memref<1x1x256xf32, #tpu.memory_space<vmem>>, vector<1x1x256xf32>
    %114 = vector.shape_cast %113 : vector<1x1x256xf32> to vector<1x256xf32>
    %115 = vector.shape_cast %112 : vector<1x256xf32> to vector<1x1x256xf32>
    tpu.vector_store %arg9[%c0_50, %c0_51, %c0_52], %115 {strides = array<i32>} : memref<1x1x256xf32, #tpu.memory_space<vmem>>, vector<1x1x256xf32>,
    return
  }
  func.func @transform_0(%arg0: i32) -> (i32, i32, i32) {
    %c0_i32 = arith.constant 0 : i32
    %c0_i32_0 = arith.constant 0 : i32
    %c0_i32_1 = arith.constant 0 : i32
    return %arg0, %c0_i32, %c0_i32_0 : i32, i32, i32
  }
  func.func @transform_1(%arg0: i32) -> (i32, i32, i32) {
    %c0_i32 = arith.constant 0 : i32
    %c0_i32_0 = arith.constant 0 : i32
    %c0_i32_1 = arith.constant 0 : i32
    return %arg0, %c0_i32, %c0_i32_0 : i32, i32, i32
  }
  func.func @transform_2(%arg0: i32) -> (i32, i32) {
    %c0_i32 = arith.constant 0 : i32
    %c0_i32_0 = arith.constant 0 : i32
    %c0_i32_1 = arith.constant 0 : i32
    return %c0_i32, %c0_i32_0 : i32, i32
  }
  func.func @transform_3(%arg0: i32) -> (i32, i32) {
    %c0_i32 = arith.constant 0 : i32
    %c0_i32_0 = arith.constant 0 : i32
    %c0_i32_1 = arith.constant 0 : i32
    return %c0_i32, %c0_i32_0 : i32, i32
  }
  func.func @transform_4(%arg0: i32) -> (i32, i32) {
    %c0_i32 = arith.constant 0 : i32
    %c0_i32_0 = arith.constant 0 : i32
    %c0_i32_1 = arith.constant 0 : i32
    return %c0_i32, %c0_i32_0 : i32, i32
  }
  func.func @transform_5(%arg0: i32) -> (i32, i32) {
    %c0_i32 = arith.constant 0 : i32
    %c0_i32_0 = arith.constant 0 : i32
    %c0_i32_1 = arith.constant 0 : i32
    return %c0_i32, %c0_i32_0 : i32, i32
  }
  func.func @transform_6(%arg0: i32) -> (i32, i32) {
    %c0_i32 = arith.constant 0 : i32
    %c0_i32_0 = arith.constant 0 : i32
    %c0_i32_1 = arith.constant 0 : i32
    return %c0_i32, %c0_i32_0 : i32, i32
  }
  func.func @transform_7(%arg0: i32) -> i32 {
    %c0_i32 = arith.constant 0 : i32
    %c0_i32_0 = arith.constant 0 : i32
    return %c0_i32 : i32
  }
  func.func @transform_8(%arg0: i32) -> (i32, i32, i32) {
    %c0_i32 = arith.constant 0 : i32
    %c0_i32_0 = arith.constant 0 : i32
    %c0_i32_1 = arith.constant 0 : i32
    return %arg0, %c0_i32, %c0_i32_0 : i32, i32, i32
  }
}

</mosaic_0001>

<bundles_post_ra>
// kernel: pretrained_diffusion_forward.1
= control target key start
LH: loop header
LB: loop body
LE: loop exit
PB: predicated region body
PF: predicated region fallthrough
CT: control target
= control target key end

     0   :  { %s2843_s29 = smov 0   ;;  %s3653_s0 = inlined_call_operand.vmem [shape: f32[2,1,256], index: 0, kind: input, shape index: {}]   ;;  %s3654_s1 = inlined_call_operand.vmem [shape: bf16[2,1,896], index: 1, kind: input, shape index: {}]   ;;  %s3655_s2 = inlined_call_operand.vmem [shape: bf16[384,9], index: 2, kind: input, shape index: {}]   ;;  %s3656_s3 = inlined_call_operand.vmem [shape: bf16[9,384], index: 3, kind: input, shape index: {}]   ;;  %s3657_s4 = inlined_call_operand.vmem [shape: bf16[896,9], index: 4, kind: input, shape index: {}]   ;;  %s3658_s5 = inlined_call_operand.vmem [shape: f32[1,9], index: 5, kind: input, shape index: {}]   ;;  %s3659_s6 = inlined_call_operand.vmem [shape: f32[9,256], index: 6, kind: input, shape index: {}]   ;;  %s3660_s7 = inlined_call_operand.<no memory space> [shape: f32[1], index: 7, kind: input, shape index: {}]   ;;  %s3661_s8 = inlined_call_operand.vmem [shape: f32[2,1,256], index: 8, kind: output, shape index: {}]  }
   0x1   :  { %13 = sst [smem:[#allocation3]] %s3660_s7 }
   0x2 LB: > { %s2449_s30 = sadd.s32 4294967295, %s2780_s29   ;;  %p2453_p0 = scmp.ge.s32.totalorder %s2780_s29, 1  ;;  %s2780_s29 = sphi %s2843_s29, %s19_s29  }
   0x3   : > { %p271_p1 = scmp.lt.s32.totalorder %s2780_s29, 3 }
   0x5   : > { %p272_p2 = pnand %p2453_p0, %p271_p1 }
   0x7   : > { %275 = sbr.rel (%p272_p2) target bundleno = 1261 (0x4ed), region = 52 }
   0xc   : > { %p307_p3 = scmp.lt.s32.totalorder %s2449_s30, 1  ;;  %v326_v0 = vlaneseq  ;;  %v2782_v1 = vmov 1966171168   ;;  %v2856_v3 = vld [vmem:[%s3659_s6] sm:$0xff]  ;;  %v2861_v4 = vld [vmem:[%s3659_s6 + $0x8] sm:$0xff]  ;;  %s2783_s16 = smov 16  }
   0xd   : > { %v351_v2 = vunpack.c.l.s4 %v2782_v1  ;;  %v475_v7 = vcombine.high %v2856_v3, %v2861_v4  ;;  %s2784_s17 = smov 17   ;;  %v3685_v17 = vmov 0  ;;  %s2785_s18 = smov 15   ;;  %v3662_v18 = vmov 0  }
   0xe   : > { %s3732_s30 = smov (!%p307_p3, %s2449_s30), 1  ;;  %v327_v5 = vshrl.u32 %v326_v0, 7  ;;  %vm2877_vm0 = vcmp.lt.s32.totalorder %v326_v0, 256  ;;  %s2786_s19 = smov 1   ;;  %967 = vmatprep.mubr.bf16.mxu1 %v3662_v18  ;;  %756 = vmatprep.mubr.bf16.mxu0 %v3662_v18  ;;  %v2899_v19 = vand.u32 127, %v326_v0  ;;  %v380_v22 = vrot.slane %v2856_v3, 1 }
   0xf   : > { %v352_v6 = vunpack.c.0.s8 %v351_v2  ;;  %s2454_s12 = sshll.u32 %s3732_s30, 1  ;;  %v3686_v17 = vsel %vm2877_vm0, 4294967295, %v3685_v17  ;;  %s2787_s20 = smov 127   ;;  %v381_v23 = vrot.slane %v2861_v4, 1  ;;  %v414_v26 = vrot.slane %v2856_v3, 2 }
  0x10   : > { %v328_v8 = vsub.s32 0, %v327_v5  ;;  %s310_s15 = scalar_lea.vmem %s3653_s0, %s2454_s12  ;;  %v332_v10 = vsub.s32 1, %v327_v5  ;;  %3687 = vst [vmem:[#allocation5_spill] sm:$0xff] %v3686_v17  ;;  %s2788_s21 = smov 113   ;;  %3688 = vst [vmem:[#allocation6_spill] sm:$0xff] %v2899_v19  ;;  %vm375_vm1 = vcmp.lt.s32.totalorder %v2899_v19, 16 }
  0x11   : > { %v2871_v9 = vsub.s32 %v352_v6, %v327_v5  ;;  %v324_v11 = vld [vmem:[%s310_s15] sm:$0x3]  ;;  %s2789_s22 = smov 112   ;;  %s2790_s23 = smov 111   ;;  %vm342_vm2 = vcmp.lt.s32.totalorder %v2899_v19, 17  ;;  %vm411_vm3 = vcmp.lt.s32.totalorder %v2899_v19, 15 }
  0x12   : > { %v329_v12 = vrot.slane %v324_v11, %v328_v8  ;;  %v333_v15 = vrot.slane %v324_v11, %v332_v10  ;;  %v415_v27 = vrot.slane %v2861_v4, 2  ;;  %vm445_vm4 = vcmp.lt.s32.totalorder %v2899_v19, 1  ;;  %s2663_s11 = smul.u32 7, %s3732_s30  ;;  %s318_s15 = scalar_lea.vmem %s3661_s8, %s2454_s12 }
  0x13   : > { %3684 = vst [vmem:[#allocation4_spill] sm:$0xff] %v2871_v9  ;;  %v482_v13 = vrot.slane %v475_v7, %v2871_v9  ;;  %v448_v42 = vrot.slane %v2856_v3, 3  ;;  %v449_v43 = vrot.slane %v2861_v4, 3  ;;  %vm499_vm5 = vcmp.lt.s32.totalorder %v2899_v19, 127 }
  0x14   : > { %371 = vrot.lane.b32.xlu1 %v329_v12, %s2783_s16  ;;  %336 = vrot.lane.b32.xlu0 %v329_v12, %s2784_s17  ;;  %v502_v55 = vrot.slane %v2856_v3, 5  ;;  %v503_v59 = vrot.slane %v2861_v4, 5  ;;  %vm533_vm6 = vcmp.lt.s32.totalorder %v2899_v19, 113  ;;  %v536_v2 = vrot.slane %v2856_v3, 6  ;;  %s314_s25 = scalar_lea.vmem %s3654_s1, %s2663_s11 }
  0x15   : > { %v489_v14 = vrot.slane %v482_v13, %v2871_v9  ;;  %v537_v8 = vrot.slane %v2861_v4, 6  ;;  %vm567_vm7 = vcmp.lt.s32.totalorder %v2899_v19, 112  ;;  %vm601_vm8 = vcmp.lt.s32.totalorder %v2899_v19, 111 }
  0x16   : > { %vm714_vm9 = vcmask 1043456   ;;  %vm715_vm10 = vcmask 1044480   ;;  %vm689_vm11 = vcmask 72704   ;;  %vm2794_vm12 = vmmov 0  }
  0x17   : > { %v491_v16 = vmul.f32 %v489_v14, %v324_v11  ;;  %vm2099_vm13 = vcmask 1040384  }
  0x18   : > { %373 = vrot.lane.b32.xlu1 %v333_v15, %s2783_s16  ;;  %338 = vrot.lane.b32.xlu0 %v333_v15, %s2784_s17 }
  0x19   : > { %493 = vst.msk [vmem:[#allocation2 + $0x4] ss:$8 sm:$0x3] %vm2877_vm0, %v491_v16  ;;  %v570_v16 = vrot.slane %v2856_v3, 7 }
  0x1c   : > { %409 = vrot.lane.b32.xlu1 %v333_v15, %s2785_s18  ;;  %407 = vrot.lane.b32.xlu0 %v329_v12, %s2785_s18 }
  0x20   : > { %443 = vrot.lane.b32.xlu1 %v333_v15, %s2786_s19  ;;  %441 = vrot.lane.b32.xlu0 %v329_v12, %s2786_s19 }
  0x24   : > { %497 = vrot.lane.b32.xlu1 %v333_v15, %s2787_s20  ;;  %495 = vrot.lane.b32.xlu0 %v329_v12, %s2787_s20 }
  0x28   : > { %531 = vrot.lane.b32.xlu1 %v333_v15, %s2788_s21  ;;  %529 = vrot.lane.b32.xlu0 %v329_v12, %s2788_s21 }
  0x2c   : > { %565 = vrot.lane.b32.xlu1 %v333_v15, %s2789_s22  ;;  %563 = vrot.lane.b32.xlu0 %v329_v12, %s2789_s22 }
  0x30   : > { %599 = vrot.lane.b32.xlu1 %v333_v15, %s2790_s23  ;;  %597 = vrot.lane.b32.xlu0 %v329_v12, %s2790_s23 }
  0x86   : > { %v372_v20 = vpop.permute.xlu1 %371  ;;  %v337_v21 = vpop.permute.xlu0 %336 }
  0x8a   : > { %v374_v24 = vpop.permute.xlu1 %373  ;;  %v339_v25 = vpop.permute.xlu0 %338 }
  0x8b   : > { %v376_v28 = vsel %vm375_vm1, %v372_v20, %v374_v24  ;;  %v377_v29 = vsel %vm375_vm1, %v374_v24, %v372_v20  ;;  %v343_v30 = vsel %vm342_vm2, %v337_v21, %v339_v25  ;;  %v344_v31 = vsel %vm342_vm2, %v339_v25, %v337_v21 }
  0x8c   : > { %v384_v32 = vmul.f32 %v380_v22, %v377_v29  ;;  %v385_v33 = vmul.f32 %v381_v23, %v376_v28  ;;  %v345_v34 = vmul.f32 %v344_v31, %v2856_v3  ;;  %v346_v35 = vmul.f32 %v343_v30, %v2861_v4 }
  0x8d   : > { %v571_v23 = vrot.slane %v2861_v4, 7  ;;  %v2975_v4 = vld [vmem:[%s3659_s6 + $0x10] sm:$0x1] }
  0x8e   : > { %v388_v36 = vcombine.low %v384_v32, %v385_v33  ;;  %v349_v37 = vcombine.low %v345_v34, %v346_v35  ;;  %v410_v38 = vpop.permute.xlu1 %409  ;;  %v408_v39 = vpop.permute.xlu0 %407  ;;  %3689 = vst [vmem:[#allocation7_spill] sm:$0xff] %v2975_v4  ;;  %v2980_v32 = vld [vmem:[%s3659_s6 + $0x18] sm:$0x1] }
  0x8f   : > { %v412_v40 = vsel %vm411_vm3, %v408_v39, %v410_v38  ;;  %v413_v41 = vsel %vm411_vm3, %v410_v38, %v408_v39  ;;  %3690 = vst [vmem:[#allocation8_spill] sm:$0xff] %v2980_v32 }
  0x90   : > { %v395_v44 = vrot.slane %v388_v36, %v2871_v9  ;;  %v356_v45 = vrot.slane %v349_v37, %v2871_v9  ;;  %v418_v46 = vmul.f32 %v414_v26, %v413_v41  ;;  %v419_v47 = vmul.f32 %v415_v27, %v412_v40 }
  0x92   : > { %v402_v48 = vrot.slane %v395_v44, %v2871_v9  ;;  %v363_v49 = vrot.slane %v356_v45, %v2871_v9  ;;  %v422_v50 = vcombine.low %v418_v46, %v419_v47  ;;  %v444_v51 = vpop.permute.xlu1 %443  ;;  %v442_v52 = vpop.permute.xlu0 %441  ;;  %v2792_v46 = vmov 65535  }
  0x93   : > { %v446_v53 = vsel %vm445_vm4, %v442_v52, %v444_v51  ;;  %v447_v54 = vsel %vm445_vm4, %v444_v51, %v442_v52  ;;  %v716_v47 = vsel %vm714_vm9, 4294967295, %v2792_v46 }
  0x94   : > { %405 = vst.msk [vmem:[#allocation2 + $0x1] ss:$8 sm:$0x3] %vm2877_vm0, %v402_v48  ;;  %369 = vst.msk [vmem:[#allocation2] ss:$8 sm:$0x3] %vm2877_vm0, %v363_v49  ;;  %v429_v56 = vrot.slane %v422_v50, %v2871_v9  ;;  %v452_v57 = vmul.f32 %v448_v42, %v447_v54  ;;  %v453_v58 = vmul.f32 %v449_v43, %v446_v53 }
  0x95   : > { %v717_v50 = vsel %vm715_vm10, %v716_v47, 0 }
  0x96   : > { %v436_v60 = vrot.slane %v429_v56, %v2871_v9  ;;  %v456_v61 = vcombine.low %v452_v57, %v453_v58  ;;  %v498_v62 = vpop.permute.xlu1 %497  ;;  %v496_v63 = vpop.permute.xlu0 %495  ;;  %v2686_v57 = vld [vmem:[%s3655_s2 + $0x40] sm:$0xff]  }
  0x97   : > { %v500_v0 = vsel %vm499_vm5, %v496_v63, %v498_v62  ;;  %v501_v1 = vsel %vm499_vm5, %v498_v62, %v496_v63  ;;  %v2690_v58 = vld [vmem:[%s3655_s2] sm:$0xff]   ;;  %v2694_v62 = vld [vmem:[%s3655_s2 + $0x10] sm:$0xff]   ;;  %v2689_v63 = vld [vmem:[%s3655_s2 + $0x58] sm:$0xff]  }
  0x98   : > { %439 = vst.msk [vmem:[#allocation2 + $0x2] ss:$8 sm:$0x3] %vm2877_vm0, %v436_v60  ;;  %v463_v5 = vrot.slane %v456_v61, %v2871_v9  ;;  %v506_v6 = vmul.f32 %v502_v55, %v500_v0  ;;  %v507_v7 = vmul.f32 %v503_v59, %v501_v1  ;;  %v2687_v59 = vld [vmem:[%s3655_s2 + $0x48] sm:$0xff]   ;;  %v2688_v61 = vld [vmem:[%s3655_s2 + $0x50] sm:$0xff]   ;;  %v2696_v0 = vld [vmem:[%s3655_s2 + $0x18] sm:$0xff]  }
  0x99   : > { %v2692_v60 = vld [vmem:[%s3655_s2 + $0x8] sm:$0xff]   ;;  %v2691_v1 = vld [vmem:[%s3655_s2 + $0x60] sm:$0xff]  }
  0x9a   : > { %v470_v10 = vrot.slane %v463_v5, %v2871_v9  ;;  %v510_v11 = vcombine.low %v506_v6, %v507_v7  ;;  %v532_v12 = vpop.permute.xlu1 %531  ;;  %v530_v13 = vpop.permute.xlu0 %529  ;;  %v2693_v5 = vld [vmem:[%s3655_s2 + $0x68] sm:$0xff]   ;;  %v2695_v7 = vld [vmem:[%s3655_s2 + $0x70] sm:$0xff]  }
  0x9b   : > { %v534_v14 = vsel %vm533_vm6, %v530_v13, %v532_v12  ;;  %v535_v15 = vsel %vm533_vm6, %v532_v12, %v530_v13  ;;  %v2699_v6 = vld [vmem:[%s3655_s2 + $0x28] sm:$0xff]  }
  0x9c   : > { %473 = vst.msk [vmem:[#allocation2 + $0x3] ss:$8 sm:$0x3] %vm2877_vm0, %v470_v10  ;;  %v517_v20 = vrot.slane %v510_v11, %v2871_v9  ;;  %v540_v21 = vmul.f32 %v536_v2, %v534_v14  ;;  %v541_v22 = vmul.f32 %v537_v8, %v535_v15  ;;  %v2698_v2 = vld [vmem:[%s3655_s2 + $0x20] sm:$0xff]   ;;  %v2700_v8 = vld [vmem:[%s3655_s2 + $0x30] sm:$0xff]   ;;  %v2697_v10 = vld [vmem:[%s3655_s2 + $0x78] sm:$0xff]  }
  0x9d   : > { %v2701_v11 = vld [vmem:[%s3655_s2 + $0x38] sm:$0xff]  }
  0x9e   : > { %v524_v24 = vrot.slane %v517_v20, %v2871_v9  ;;  %v544_v25 = vcombine.low %v540_v21, %v541_v22  ;;  %v566_v26 = vpop.permute.xlu1 %565  ;;  %v564_v27 = vpop.permute.xlu0 %563 }
  0x9f   : > { %v568_v28 = vsel %vm567_vm7, %v564_v27, %v566_v26  ;;  %v569_v3 = vsel %vm567_vm7, %v566_v26, %v564_v27 }
  0xa0   : > { %527 = vst.msk [vmem:[#allocation2 + $0x5] ss:$8 sm:$0x3] %vm2877_vm0, %v524_v24  ;;  %v551_v29 = vrot.slane %v544_v25, %v2871_v9  ;;  %v574_v30 = vmul.f32 %v570_v16, %v568_v28  ;;  %v575_v31 = vmul.f32 %v571_v23, %v569_v3 }
  0xa2   : > { %v558_v33 = vrot.slane %v551_v29, %v2871_v9  ;;  %v578_v34 = vcombine.low %v574_v30, %v575_v31  ;;  %v600_v35 = vpop.permute.xlu1 %599  ;;  %v598_v36 = vpop.permute.xlu0 %597 }
  0xa3   : > { %v602_v37 = vsel %vm601_vm8, %v598_v36, %v600_v35  ;;  %v603_v38 = vsel %vm601_vm8, %v600_v35, %v598_v36 }
  0xa4   : > { %561 = vst.msk [vmem:[#allocation2 + $0x6] ss:$8 sm:$0x3] %vm2877_vm0, %v558_v33  ;;  %v585_v39 = vrot.slane %v578_v34, %v2871_v9  ;;  %v604_v40 = vmul.f32 %v602_v37, %v2975_v4  ;;  %v605_v41 = vmul.f32 %v603_v38, %v2980_v32 }
  0xa6   : > { %v592_v42 = vrot.slane %v585_v39, %v2871_v9  ;;  %v608_v43 = vcombine.low %v604_v40, %v605_v41 }
  0xa8   : > { %595 = vst.msk [vmem:[#allocation2 + $0x7] ss:$8 sm:$0x3] %vm2877_vm0, %v592_v42  ;;  %v615_v44 = vrot.slane %v608_v43, %v2871_v9 }
  0xaa   : > { %v622_v45 = vrot.slane %v615_v44, %v2871_v9 }
  0xac   : > { %625 = vst.msk [vmem:[#allocation2 + $0x10] ss:$8 sm:$0x3] %vm2877_vm0, %v622_v45 }
  0xaf   : > { %v628_v48 = vld [vmem:[#allocation2 + $0x8] sm:$0xff]  ;;  %v627_v51 = vld [vmem:[#allocation2] sm:$0xff] }
  0xb3   : > { %v630_v49 = vld [vmem:[#allocation2 + $0x18] sm:$0x1]  ;;  %v629_v52 = vld [vmem:[#allocation2 + $0x10] sm:$0x1] }
  0xb4   : > { %v632_v53 = vpack.c.bf16 %v630_v49, %v628_v48  ;;  %v631_v54 = vpack.c.bf16 %v629_v52, %v627_v51 }
  0xb6   : > { %v2999_v55 = vand.u32 %v717_v50, %v632_v53  ;;  %v3001_v56 = vand.u32 %v717_v50, %v631_v54 }
  0xb8   : > { %3691 = vst [vmem:[#allocation9_spill] sm:$0xff] %v2999_v55  ;;  %3692 = vst [vmem:[#allocation10_spill] sm:$0xff] %v3001_v56  ;;  %738 = vmatprep.subr.bf16.mxu0 %v2999_v55  ;;  %949 = vmatprep.subr.bf16.mxu1 %v2999_v55 }
  0xb9   : > { %739 = vmatpush1.bf16.msra.mxu0 %v3001_v56  ;;  %950 = vmatpush1.bf16.msra.mxu1 %v3001_v56 }
  0xbc   : > { %2480 = vmatmul.mubr.msk.bf16.vlgmr.msra.gmra.mxu1 %vm689_vm11, %v2686_v57  ;;  %2464 = vmatmul.mubr.msk.bf16.vlgmr.msra.gmra.mxu0 %vm689_vm11, %v2690_v58 }
  0xbd   : > { %977 = vmatprep.mubr.bf16.mxu1 %v3662_v18  ;;  %766 = vmatprep.mubr.bf16.mxu0 %v3662_v18 }
  0xc4   : > { %2481 = vmatmul.mubr.msk.bf16.gmra.mxu1 %vm689_vm11, %v2687_v59  ;;  %2465 = vmatmul.mubr.msk.bf16.gmra.mxu0 %vm689_vm11, %v2692_v60 }
  0xc5   : > { %987 = vmatprep.mubr.bf16.mxu1 %v3662_v18  ;;  %776 = vmatprep.mubr.bf16.mxu0 %v3662_v18 }
  0xcc   : > { %2482 = vmatmul.mubr.msk.bf16.gmra.mxu1 %vm689_vm11, %v2688_v61  ;;  %2466 = vmatmul.mubr.msk.bf16.gmra.mxu0 %vm689_vm11, %v2694_v62 }
  0xcd   : > { %997 = vmatprep.mubr.bf16.mxu1 %v3662_v18  ;;  %786 = vmatprep.mubr.bf16.mxu0 %v3662_v18 }
  0xd4   : > { %2483 = vmatmul.mubr.msk.bf16.gmra.mxu1 %vm689_vm11, %v2689_v63  ;;  %2467 = vmatmul.mubr.msk.bf16.gmra.mxu0 %vm689_vm11, %v2696_v0 }
  0xd5   : > { %1007 = vmatprep.mubr.bf16.mxu1 %v3662_v18  ;;  %796 = vmatprep.mubr.bf16.mxu0 %v3662_v18 }
  0xdc   : > { %2484 = vmatmul.mubr.msk.bf16.gmra.mxu1 %vm689_vm11, %v2691_v1  ;;  %2468 = vmatmul.mubr.msk.bf16.gmra.mxu0 %vm689_vm11, %v2698_v2 }
  0xdd   : > { %1017 = vmatprep.mubr.bf16.mxu1 %v3662_v18  ;;  %806 = vmatprep.mubr.bf16.mxu0 %v3662_v18 }
  0xe4   : > { %2485 = vmatmul.mubr.msk.bf16.gmra.mxu1 %vm689_vm11, %v2693_v5  ;;  %2469 = vmatmul.mubr.msk.bf16.gmra.mxu0 %vm689_vm11, %v2699_v6 }
  0xe5   : > { %1027 = vmatprep.mubr.bf16.mxu1 %v3662_v18  ;;  %816 = vmatprep.mubr.bf16.mxu0 %v3662_v18 }
  0xec   : > { %2486 = vmatmul.mubr.msk.bf16.gmra.mxu1 %vm689_vm11, %v2695_v7  ;;  %2470 = vmatmul.mubr.msk.bf16.gmra.mxu0 %vm689_vm11, %v2700_v8 }
  0xed   : > { %1037 = vmatprep.mubr.bf16.mxu1 %v3662_v18  ;;  %826 = vmatprep.mubr.bf16.mxu0 %v3662_v18 }
  0xf4   : > { %2487 = vmatmul.mubr.msk.bf16.gmra.mxu1 %vm689_vm11, %v2697_v10  ;;  %2471 = vmatmul.mubr.msk.bf16.gmra.mxu0 %vm689_vm11, %v2701_v11 }
  0xf5   : > { %1104 = vmatprep.mubr.bf16.mxu0 %v3662_v18  ;;  %1153 = vmatprep.mubr.bf16.mxu1 %v3662_v18 }
 0x17c   : > { %v3087_v12 = vpop.f32.mrf.mxu1  ;;  %v3089_v13 = vpop.f32.mrf.mxu0 }
 0x17d   : > { %3693 = vst [vmem:[#allocation11_spill] sm:$0xff] %v3087_v12  ;;  %3694 = vst [vmem:[#allocation12_spill] sm:$0xff] %v3089_v13 }
 0x17e   : > { %v3091_v14 = vpop.f32.mrf.mxu1  ;;  %v3093_v15 = vpop.f32.mrf.mxu0 }
 0x17f   : > { %3695 = vst [vmem:[#allocation13_spill] sm:$0xff] %v3091_v14  ;;  %3696 = vst [vmem:[#allocation14_spill] sm:$0xff] %v3093_v15 }
 0x180   : > { %v3095_v16 = vpop.f32.mrf.mxu1  ;;  %v3097_v20 = vpop.f32.mrf.mxu0 }
 0x181   : > { %3697 = vst [vmem:[#allocation15_spill] sm:$0xff] %v3095_v16  ;;  %3698 = vst [vmem:[#allocation16_spill] sm:$0xff] %v3097_v20 }
 0x182   : > { %v3103_v23 = vpop.f32.mrf.mxu1  ;;  %v3105_v24 = vpop.f32.mrf.mxu0 }
 0x183   : > { %3699 = vst [vmem:[#allocation17_spill] sm:$0xff] %v3103_v23  ;;  %3700 = vst [vmem:[#allocation18_spill] sm:$0xff] %v3105_v24 }
 0x184   : > { %v3111_v27 = vpop.f32.mrf.mxu1  ;;  %v3113_v28 = vpop.f32.mrf.mxu0 }
 0x185   : > { %3701 = vst [vmem:[#allocation19_spill] sm:$0xff] %v3111_v27  ;;  %3702 = vst [vmem:[#allocation20_spill] sm:$0xff] %v3113_v28 }
 0x186   : > { %v3115_v3 = vpop.f32.mrf.mxu1  ;;  %v3117_v29 = vpop.f32.mrf.mxu0 }
 0x188   : > { %v3119_v30 = vpop.f32.mrf.mxu1  ;;  %v3121_v31 = vpop.f32.mrf.mxu0 }
 0x189   : > { %3703 = vst [vmem:[#allocation21_spill] sm:$0xff] %v3121_v31 }
 0x18a   : > { %v3127_v35 = vpop.f32.mrf.mxu1  ;;  %v3129_v36 = vpop.f32.mrf.mxu0 }
 0x18c   : > { %v3135_v39 = vpop.f32.mrf.mxu1  ;;  %v3137_v40 = vpop.f32.mrf.mxu0 }
 0x18e   : > { %v3139_v41 = vpop.f32.mrf.mxu1  ;;  %v3141_v42 = vpop.f32.mrf.mxu0 }
 0x190   : > { %v3143_v43 = vpop.f32.mrf.mxu1  ;;  %v3145_v44 = vpop.f32.mrf.mxu0 }
 0x192   : > { %v3147_v45 = vpop.f32.mrf.mxu1  ;;  %v3149_v46 = vpop.f32.mrf.mxu0 }
 0x194   : > { %v3151_v47 = vpop.f32.mrf.mxu1  ;;  %v3153_v48 = vpop.f32.mrf.mxu0 }
 0x196   : > { %v3155_v49 = vpop.f32.mrf.mxu1  ;;  %v3157_v50 = vpop.f32.mrf.mxu0 }
 0x198   : > { %v3159_v51 = vpop.f32.mrf.mxu1  ;;  %v3161_v52 = vpop.f32.mrf.mxu0 }
 0x19a   : > { %v3163_v53 = vpop.f32.mrf.mxu1  ;;  %v3165_v54 = vpop.f32.mrf.mxu0 }
 0x19c   : > { %v3167_v57 = vpop.f32.mrf.mxu1  ;;  %v3169_v58 = vpop.f32.mrf.mxu0 }
 0x19e   : > { %v1011_v59 = vpop.f32.mrf.mxu1  ;;  %v800_v60 = vpop.f32.mrf.mxu0 }
 0x1a0   : > { %v1013_v61 = vpop.f32.mrf.mxu1  ;;  %v802_v62 = vpop.f32.mrf.mxu0 }
 0x1a2   : > { %v1015_v63 = vpop.f32.mrf.mxu1  ;;  %v804_v0 = vpop.f32.mrf.mxu0 }
 0x1a4   : > { %v1019_v1 = vpop.f32.mrf.mxu1  ;;  %v808_v2 = vpop.f32.mrf.mxu0 }
 0x1a6   : > { %v1021_v5 = vpop.f32.mrf.mxu1  ;;  %v810_v6 = vpop.f32.mrf.mxu0 }
 0x1a8   : > { %v1023_v7 = vpop.f32.mrf.mxu1  ;;  %v812_v8 = vpop.f32.mrf.mxu0 }
 0x1a9   : > { %v849_v27 = vpack.c.bf16 %v812_v8, %v808_v2  ;;  %v2741_v2 = vld [vmem:[%s3657_s4 + $0xc8] sm:$0xff]   ;;  %v3726_v8 = vld [vmem:[#allocation4_spill] sm:$0xff] }
 0x1aa   : > { %v1025_v10 = vpop.f32.mrf.mxu1  ;;  %v814_v11 = vpop.f32.mrf.mxu0 }
 0x1ab   : > { %v850_v23 = vpack.c.bf16 %v814_v11, %v810_v6  ;;  %v1061_v31 = vpack.c.bf16 %v1025_v10, %v1021_v5  ;;  %v2742_v6 = vld [vmem:[%s3657_s4 + $0x88] sm:$0xff]  }
 0x1ac   : > { %v1029_v18 = vpop.f32.mrf.mxu1  ;;  %v818_v22 = vpop.f32.mrf.mxu0 }
 0x1ae   : > { %v1031_v21 = vpop.f32.mrf.mxu1  ;;  %v820_v26 = vpop.f32.mrf.mxu0 }
 0x1b0   : > { %v1033_v25 = vpop.f32.mrf.mxu1  ;;  %v822_v34 = vpop.f32.mrf.mxu0 }
 0x1b1   : > { %v851_v14 = vpack.c.bf16 %v822_v34, %v818_v22  ;;  %v1062_v28 = vpack.c.bf16 %v1033_v25, %v1029_v18  ;;  %v1058_v18 = vpack.c.bf16 %v1013_v61, %v3167_v57  ;;  %v3706_v22 = vld [vmem:[#allocation19_spill] sm:$0xff]  ;;  %v3709_v25 = vld [vmem:[#allocation20_spill] sm:$0xff]  ;;  %v3715_v34 = vld [vmem:[#allocation14_spill] sm:$0xff] }
 0x1b2   : > { %v1035_v33 = vpop.f32.mrf.mxu1  ;;  %v824_v38 = vpop.f32.mrf.mxu0  ;;  %v2722_v57 = vld [vmem:[%s3657_s4 + $0xb0] sm:$0xff]   ;;  %v2730_v61 = vld [vmem:[%s3657_s4 + $0xa0] sm:$0xff]  }
 0x1b3   : > { %v852_v12 = vpack.c.bf16 %v824_v38, %v820_v26  ;;  %v1063_v24 = vpack.c.bf16 %v1035_v33, %v1031_v21  ;;  %v3705_v21 = vpack.c.bf16 %v3129_v36, %v3117_v29  ;;  %v3714_v33 = vld [vmem:[#allocation18_spill] sm:$0xff]  ;;  %v3718_v36 = vld [vmem:[#allocation11_spill] sm:$0xff]  ;;  %v3720_v38 = vld [vmem:[#allocation16_spill] sm:$0xff] }
 0x1b4   : > { %v1039_v37 = vpop.f32.mrf.mxu1  ;;  %v828_v17 = vpop.f32.mrf.mxu0  ;;  %v2702_v29 = vld [vmem:[%s3656_s3 + $0x4] ss:$12 sps:$4 sm:$0x1f]  }
 0x1b6   : > { %v1041_v19 = vpop.f32.mrf.mxu1  ;;  %v830_v4 = vpop.f32.mrf.mxu0 }
 0x1b8   : > { %v1043_v32 = vpop.f32.mrf.mxu1  ;;  %v832_v9 = vpop.f32.mrf.mxu0 }
 0x1b9   : > { %v853_v55 = vpack.c.bf16 %v832_v9, %v828_v17  ;;  %v1064_v15 = vpack.c.bf16 %v1043_v32, %v1039_v37  ;;  %v848_v9 = vpack.c.bf16 %v804_v0, %v800_v60  ;;  %v1060_v17 = vpack.c.bf16 %v1023_v7, %v1019_v1  ;;  %v2729_v60 = vld [vmem:[%s3657_s4 + $0xe0] sm:$0xff]   ;;  %v2737_v0 = vld [vmem:[%s3657_s4 + $0xd0] sm:$0xff]  }
 0x1ba   : > { %v1045_v56 = vpop.f32.mrf.mxu1  ;;  %v834_v13 = vpop.f32.mrf.mxu0  ;;  %v846_v32 = vpack.c.bf16 %v3165_v54, %v3157_v50  ;;  %v2710_v50 = vld [vmem:[%s3655_s2 + $0xb0] sm:$0xff]   ;;  %v1428_v7 = vld [vmem:[%s314_s25] sm:$0x7f] }
 0x1bb   : > { %v1065_v20 = vpack.c.bf16 %v1045_v56, %v1041_v19  ;;  %v854_v16 = vpack.c.bf16 %v834_v13, %v830_v4  ;;  %v1059_v19 = vpack.c.bf16 %v1015_v63, %v1011_v59  ;;  %v847_v4 = vpack.c.bf16 %v802_v62, %v3169_v58  ;;  %v2721_v54 = vld [vmem:[%s3657_s4 + $0xf0] sm:$0xff]   ;;  %v2725_v58 = vld [vmem:[%s3657_s4 + $0xe8] sm:$0xff]   ;;  %v2733_v62 = vld [vmem:[%s3657_s4 + $0xd8] sm:$0xff]  }
 0x1bc   : > { %v845_v56 = vpack.c.bf16 %v3161_v52, %v3153_v48  ;;  %v1056_v13 = vpack.c.bf16 %v3159_v51, %v3151_v47  ;;  %v2707_v47 = vld [vmem:[%s3655_s2 + $0x98] sm:$0xff]   ;;  %v2708_v48 = vld [vmem:[%s3655_s2 + $0xa0] sm:$0xff]   ;;  %v2726_v59 = vld [vmem:[%s3657_s4 + $0xa8] sm:$0xff]   ;;  %v1550_v10 = vrot.slane %v1428_v7, %v3726_v8 }
 0x1bd   : > { %1072 = vmatprep.subr.bf16.mxu0 %v1065_v20  ;;  %1121 = vmatprep.subr.bf16.mxu1 %v854_v16  ;;  %v1054_v16 = vpack.c.bf16 %v3143_v43, %v3135_v39  ;;  %v3704_v20 = vpack.c.bf16 %v3127_v35, %v3115_v3  ;;  %v3716_v3 = vpack.c.bf16 %v3714_v33, %v3715_v34  ;;  %v3717_v35 = vld [vmem:[#allocation15_spill] sm:$0xff]  ;;  %v3721_v39 = vld [vmem:[#allocation12_spill] sm:$0xff]  ;;  %v3725_v43 = vmov 0   ;;  %v2738_v1 = vld [vmem:[%s3657_s4 + $0x90] sm:$0xff]  }
 0x1be   : > { %1073 = vmatpush1.bf16.msra.mxu0 %v1064_v15  ;;  %1122 = vmatpush1.bf16.msra.mxu1 %v853_v55  ;;  %v1057_v55 = vpack.c.bf16 %v3163_v53, %v3155_v49  ;;  %v843_v15 = vpack.c.bf16 %v3145_v44, %v3137_v40  ;;  %v3719_v37 = vpack.c.bf16 %v3717_v35, %v3718_v36  ;;  %v2703_v44 = vld [vmem:[%s3655_s2 + $0x80] sm:$0xff]   ;;  %v2709_v49 = vld [vmem:[%s3655_s2 + $0xa8] sm:$0xff]   ;;  %v2711_v51 = vld [vmem:[%s3655_s2 + $0xb8] sm:$0xff]  }
 0x1bf   : > { %1074 = vmatprep.subr.bf16.mxu0 %v1063_v24  ;;  %1123 = vmatprep.subr.bf16.mxu1 %v852_v12  ;;  %v844_v12 = vpack.c.bf16 %v3149_v46, %v3141_v42  ;;  %v3708_v24 = vld [vmem:[#allocation21_spill] sm:$0xff]  ;;  %v3722_v40 = vpack.c.bf16 %v3720_v38, %v3721_v39  ;;  %v3724_v42 = vld [vmem:[#allocation10_spill] sm:$0xff]  ;;  %v2717_v52 = vld [vmem:[%s3657_s4 + $0xf8] sm:$0xff]  }
 0x1c0   : > { %v3710_v26 = vpack.c.bf16 %v3708_v24, %v3709_v25  ;;  %v2705_v46 = vld [vmem:[%s3655_s2 + $0x90] sm:$0xff]   ;;  %v2718_v53 = vld [vmem:[%s3657_s4 + $0xb8] sm:$0xff]  }
 0x1c1   : > { %v2734_v63 = vld [vmem:[%s3657_s4 + $0x98] sm:$0xff]  }
 0x1c2   : > { %1075 = vmatpush1.bf16.msra.mxu0 %v1062_v28  ;;  %1124 = vmatpush1.bf16.msra.mxu1 %v851_v14  ;;  %v1055_v14 = vpack.c.bf16 %v3147_v45, %v3139_v41  ;;  %v3712_v28 = vld [vmem:[#allocation13_spill] sm:$0xff] }
 0x1c3   : > { %1076 = vmatprep.subr.bf16.mxu0 %v1061_v31  ;;  %1125 = vmatprep.subr.bf16.mxu1 %v850_v23  ;;  %v3707_v23 = vpack.c.bf16 %v3119_v30, %v3706_v22  ;;  %v2706_v30 = vld [vmem:[%s3656_s3] ss:$12 sps:$4 sm:$0x1f]  }
 0x1c4   : > { %v3723_v41 = vld [vmem:[#allocation9_spill] sm:$0xff] }
 0x1c5   : > { %v2704_v45 = vld [vmem:[%s3655_s2 + $0x88] sm:$0xff]  }
 0x1c6   : > { %1077 = vmatpush1.bf16.msra.mxu0 %v1060_v17  ;;  %1126 = vmatpush1.bf16.msra.mxu1 %v849_v27  ;;  %v3711_v27 = vld [vmem:[#allocation17_spill] sm:$0xff]  ;;  %v2745_v17 = vld [vmem:[%s3657_s4 + $0xc0] sm:$0xff]  }
 0x1c7   : > { %1078 = vmatprep.subr.bf16.mxu0 %v1059_v19  ;;  %1127 = vmatprep.subr.bf16.mxu1 %v848_v9  ;;  %v3713_v31 = vpack.c.bf16 %v3711_v27, %v3712_v28  ;;  %v1558_v9 = vcombine.high %v1550_v10, %v1550_v10 }
 0x1ca   : > { %1079 = vmatpush1.bf16.msra.mxu0 %v1058_v18  ;;  %1128 = vmatpush1.bf16.msra.mxu1 %v847_v4  ;;  %v2746_v4 = vld [vmem:[%s3657_s4 + $0x80] sm:$0xff]  }
 0x1cb   : > { %1080 = vmatprep.subr.bf16.mxu0 %v1057_v55  ;;  %1129 = vmatprep.subr.bf16.mxu1 %v846_v32  ;;  %v3322_v32 = vrot.slane %v1558_v9, %v3726_v8  ;;  %v3327_v55 = vrot.slane %v1550_v10, %v3726_v8 }
 0x1ce   : > { %1081 = vmatpush1.bf16.msra.mxu0 %v1056_v13  ;;  %1130 = vmatpush1.bf16.msra.mxu1 %v845_v56  ;;  %v1590_v56 = vcombine.high %v3322_v32, %v3322_v32  ;;  %v1588_v13 = vcombine.high %v3327_v55, %v3327_v55 }
 0x1cf   : > { %1082 = vmatprep.subr.bf16.mxu0 %v1055_v14  ;;  %1131 = vmatprep.subr.bf16.mxu1 %v844_v12  ;;  %v2749_v14 = vld [vmem:[%s3657_s4 + $0x1b8] sm:$0xff]  }
 0x1d2   : > { %1083 = vmatpush1.bf16.msra.mxu0 %v1054_v16  ;;  %1132 = vmatpush1.bf16.msra.mxu1 %v843_v15  ;;  %v2793_v15 = vmov 0.0  }
 0x1d3   : > { %1084 = vmatprep.subr.bf16.mxu0 %v3704_v20  ;;  %1133 = vmatprep.subr.bf16.mxu1 %v3705_v21  ;;  %v2752_v21 = vld [vmem:[%s3657_s4 + $0x1b0] sm:$0xff]  }
 0x1d6   : > { %1085 = vmatpush1.bf16.msra.mxu0 %v3707_v23  ;;  %1134 = vmatpush1.bf16.msra.mxu1 %v3710_v26  ;;  %v2755_v26 = vld [vmem:[%s3657_s4 + $0x1a8] sm:$0xff]  }
 0x1d7   : > { %1086 = vmatprep.subr.bf16.mxu0 %v3713_v31  ;;  %1135 = vmatprep.subr.bf16.mxu1 %v3716_v3  ;;  %v2758_v31 = vld [vmem:[%s3657_s4 + $0x1a0] sm:$0xff]  }
 0x1da   : > { %1087 = vmatpush1.bf16.msra.mxu0 %v3719_v37  ;;  %1136 = vmatpush1.bf16.msra.mxu1 %v3722_v40  ;;  %v2764_v37 = vld [vmem:[%s3657_s4 + $0x190] sm:$0xff]   ;;  %v1543_v40 = vcombine.high %v1428_v7, %v1428_v7 }
 0x1db   : > { %1258 = vmatprep.subr.bf16.mxu0 %v3723_v41  ;;  %v2768_v41 = vld [vmem:[%s3657_s4 + $0x188] sm:$0xff]  }
 0x1dd   : > { %1105 = vmatmul.mubr.bf16.vlgmr.msra.gmra.mxu0 %v2702_v29  ;;  %1154 = vmatmul.mubr.bf16.vlgmr.msra.gmra.mxu1 %v2706_v30  ;;  %v2761_v30 = vld [vmem:[%s3657_s4 + $0x198] sm:$0xff]  }
 0x1de   : > { %1259 = vmatpush1.bf16.msra.mxu0 %v3724_v42  ;;  %1276 = vmatprep.mubr.bf16.mxu0 %v3725_v43 }
 0x1df   : > { %1413 = vmatprep.mubr.bf16.mxu1 %v3725_v43  ;;  %2590 = vmatprep.subr.bf16.mxu0 %v2717_v52 }
 0x1e5   : > { %2498 = vmatmul.mubr.msk.bf16.vlgmr.msra.gmra.mxu0 %vm689_vm11, %v2703_v44 }
 0x1e6   : > { %1286 = vmatprep.mubr.bf16.mxu0 %v3725_v43  ;;  %2591 = vmatpush3.bf16.msra.mxu0 %v2718_v53 }
 0x1e7   : > { %2592 = vmatprep.subr.bf16.mxu0 %v2721_v54 }
 0x1ea   : > { %2593 = vmatpush3.bf16.msra.mxu0 %v2722_v57 }
 0x1eb   : > { %2594 = vmatprep.subr.bf16.mxu0 %v2725_v58 }
 0x1ed   : > { %2499 = vmatmul.mubr.msk.bf16.gmra.mxu0 %vm689_vm11, %v2704_v45  ;;  %v2769_v45 = vld [vmem:[%s3657_s4 + $0x180] sm:$0xff]  }
 0x1ee   : > { %1296 = vmatprep.mubr.bf16.mxu0 %v3725_v43  ;;  %2595 = vmatpush3.bf16.msra.mxu0 %v2726_v59 }
 0x1ef   : > { %2596 = vmatprep.subr.bf16.mxu0 %v2729_v60 }
 0x1f2   : > { %2597 = vmatpush3.bf16.msra.mxu0 %v2730_v61 }
 0x1f3   : > { %2598 = vmatprep.subr.bf16.mxu0 %v2733_v62 }
 0x1f5   : > { %2500 = vmatmul.mubr.msk.bf16.gmra.mxu0 %vm689_vm11, %v2705_v46 }
 0x1f6   : > { %1306 = vmatprep.mubr.bf16.mxu0 %v3725_v43  ;;  %2599 = vmatpush3.bf16.msra.mxu0 %v2734_v63 }
 0x1f7   : > { %2600 = vmatprep.subr.bf16.mxu0 %v2737_v0 }
 0x1fa   : > { %2601 = vmatpush3.bf16.msra.mxu0 %v2738_v1 }
 0x1fb   : > { %2602 = vmatprep.subr.bf16.mxu0 %v2741_v2 }
 0x1fd   : > { %2501 = vmatmul.mubr.msk.bf16.gmra.mxu0 %vm689_vm11, %v2707_v47 }
 0x1fe   : > { %1316 = vmatprep.mubr.bf16.mxu0 %v3725_v43  ;;  %2603 = vmatpush3.bf16.msra.mxu0 %v2742_v6 }
 0x1ff   : > { %2604 = vmatprep.subr.bf16.mxu0 %v2745_v17 }
 0x202   : > { %2605 = vmatpush3.bf16.msra.mxu0 %v2746_v4 }
 0x203   : > { %2643 = vmatprep.subr.bf16.mxu0 %v2793_v15 }
 0x205   : > { %2502 = vmatmul.mubr.msk.bf16.gmra.mxu0 %vm689_vm11, %v2708_v48 }
 0x206   : > { %1326 = vmatprep.mubr.bf16.mxu0 %v3725_v43 }
 0x20d   : > { %2503 = vmatmul.mubr.msk.bf16.gmra.mxu0 %vm689_vm11, %v2709_v49 }
 0x20e   : > { %1336 = vmatprep.mubr.bf16.mxu0 %v3725_v43 }
 0x215   : > { %2504 = vmatmul.mubr.msk.bf16.gmra.mxu0 %vm689_vm11, %v2710_v50 }
 0x216   : > { %1346 = vmatprep.mubr.bf16.mxu0 %v3725_v43  ;;  %v3388_v43 = vrot.slane %v1543_v40, %v3726_v8 }
 0x218   : > { %v3396_v46 = vrot.slane %v3388_v43, %v3726_v8 }
 0x21a   : > { %v1589_v48 = vcombine.high %v3396_v46, %v3396_v46 }
 0x21d   : > { %2505 = vmatmul.mubr.msk.bf16.gmra.mxu0 %vm689_vm11, %v2711_v51 }
 0x21e   : > { %2006 = vmatprep.mubr.bf16.mxu0 %v1590_v56 }
 0x225   : > { %2007 = vmatmul.mubr.bf16.vlgmr.msra.gmra.mxu0 %v1588_v13 }
 0x226   : > { %2644 = vmatpush3.bf16.msra.mxu0 %v2749_v14  ;;  %2659 = vmatprep.mubr.msk.bf16.mxu0 %vm2794_vm12, %v2793_v15 }
 0x227   : > { %2645 = vmatprep.subr.bf16.mxu0 %v2793_v15 }
 0x22a   : > { %2646 = vmatpush3.bf16.msra.mxu0 %v2752_v21 }
 0x22b   : > { %2647 = vmatprep.subr.bf16.mxu0 %v2793_v15 }
 0x22e   : > { %2648 = vmatpush3.bf16.msra.mxu0 %v2755_v26 }
 0x22f   : > { %2649 = vmatprep.subr.bf16.mxu0 %v2793_v15 }
 0x232   : > { %2650 = vmatpush3.bf16.msra.mxu0 %v2758_v31 }
 0x233   : > { %2651 = vmatprep.subr.bf16.mxu0 %v2793_v15 }
 0x236   : > { %2652 = vmatpush3.bf16.msra.mxu0 %v2761_v30  ;;  %v2713_v30 = vld [vmem:[%s3657_s4 + $0x78] sm:$0xff]  }
 0x237   : > { %2653 = vmatprep.subr.bf16.mxu0 %v2793_v15 }
 0x23a   : > { %2654 = vmatpush3.bf16.msra.mxu0 %v2764_v37  ;;  %v1559_v37 = vcombine.high %v3388_v43, %v3388_v43  ;;  %v2750_v43 = vld [vmem:[%s3657_s4 + $0x168] sm:$0xff]  }
 0x23b   : > { %2655 = vmatprep.subr.bf16.mxu0 %v2793_v15 }
 0x23c   : > { %v1587_v40 = vrot.slane %v1559_v37, %v3726_v8 }
 0x23e   : > { %2656 = vmatpush3.bf16.msra.mxu0 %v2768_v41  ;;  %v2747_v41 = vld [vmem:[%s3657_s4 + $0x170] sm:$0xff]  }
 0x23f   : > { %2657 = vmatprep.subr.bf16.mxu0 %v2793_v15 }
 0x242   : > { %2658 = vmatpush3.bf16.msra.mxu0 %v2769_v45  ;;  %v2754_v45 = vld [vmem:[%s3657_s4 + $0x120] sm:$0xff]  }
 0x245   : > { %2660 = vmatmul.mubr.bf16.vlgmr.msra.gmra.mxu0 %v1589_v48  ;;  %v2757_v48 = vld [vmem:[%s3657_s4 + $0x118] sm:$0xff]  }
 0x29d   : > { %v3305_v5 = vpop.f32.mrf.mxu0 }
 0x29f   : > { %v3311_v11 = vpop.f32.mrf.mxu0 }
 0x2a1   : > { %v3316_v19 = vpop.f32.mrf.mxu0 }
 0x2a3   : > { %v3324_v18 = vpop.f32.mrf.mxu0 }
 0x2a5   : > { %v3331_v12 = vpop.f32.mrf.mxu0 }
 0x2a7   : > { %v3339_v16 = vpop.f32.mrf.mxu0 }
 0x2a9   : > { %v3341_v20 = vpop.f32.mrf.mxu0 }
 0x2aa   : > { %v1359_v22 = vpack.c.bf16 %v3341_v20, %v3331_v12  ;;  %v2719_v12 = vld [vmem:[%s3657_s4 + $0x68] sm:$0xff]  }
 0x2ab   : > { %v3349_v23 = vpop.f32.mrf.mxu0  ;;  %v2720_v20 = vld [vmem:[%s3657_s4 + $0x28] sm:$0xff]  }
 0x2ac   : > { %v1360_v24 = vpack.c.bf16 %v3349_v23, %v3339_v16  ;;  %v2715_v16 = vld [vmem:[%s3657_s4 + $0x70] sm:$0xff]  }
 0x2ad   : > { %v3353_v25 = vpop.f32.mrf.mxu0  ;;  %v2716_v23 = vld [vmem:[%s3657_s4 + $0x30] sm:$0xff]  }
 0x2af   : > { %v3359_v27 = vpop.f32.mrf.mxu0 }
 0x2b1   : > { %v3361_v28 = vpop.f32.mrf.mxu0 }
 0x2b2   : > { %v1361_v33 = vpack.c.bf16 %v3361_v28, %v3353_v25  ;;  %v2714_v25 = vld [vmem:[%s3657_s4 + $0x38] sm:$0xff]   ;;  %v2731_v28 = vld [vmem:[%s3657_s4 + $0x50] sm:$0xff]  }
 0x2b3   : > { %v3369_v34 = vpop.f32.mrf.mxu0 }
 0x2b4   : > { %v1362_v3 = vpack.c.bf16 %v3369_v34, %v3359_v27  ;;  %v2728_v27 = vld [vmem:[%s3657_s4 + $0x18] sm:$0xff]   ;;  %v2735_v34 = vld [vmem:[%s3657_s4 + $0x48] sm:$0xff]  }
 0x2b5   : > { %v3373_v29 = vpop.f32.mrf.mxu0 }
 0x2b7   : > { %v1300_v35 = vpop.f32.mrf.mxu0 }
 0x2b9   : > { %v1302_v36 = vpop.f32.mrf.mxu0 }
 0x2ba   : > { %v1363_v31 = vpack.c.bf16 %v1302_v36, %v3373_v29  ;;  %v2712_v29 = vld [vmem:[%s3656_s3 + $0x8] ss:$12 sps:$4 sm:$0x1f]   ;;  %v2740_v36 = vld [vmem:[%s3657_s4] sm:$0xff]  }
 0x2bb   : > { %v1304_v38 = vpop.f32.mrf.mxu0 }
 0x2bc   : > { %v1364_v26 = vpack.c.bf16 %v1304_v38, %v1300_v35  ;;  %v2739_v35 = vld [vmem:[%s3657_s4 + $0x40] sm:$0xff]   ;;  %v2743_v38 = vld [vmem:[%s3657_s4 + $0x178] sm:$0xff]  }
 0x2bd   : > { %v1308_v39 = vpop.f32.mrf.mxu0 }
 0x2bf   : > { %v1310_v42 = vpop.f32.mrf.mxu0 }
 0x2c1   : > { %v1312_v44 = vpop.f32.mrf.mxu0 }
 0x2c2   : > { %v1365_v21 = vpack.c.bf16 %v1312_v44, %v1308_v39  ;;  %v2744_v39 = vld [vmem:[%s3657_s4 + $0x138] sm:$0xff]   ;;  %v2751_v44 = vld [vmem:[%s3657_s4 + $0x128] sm:$0xff]  }
 0x2c3   : > { %v1314_v47 = vpop.f32.mrf.mxu0 }
 0x2c4   : > { %v1366_v14 = vpack.c.bf16 %v1314_v47, %v1310_v42  ;;  %v2748_v42 = vld [vmem:[%s3657_s4 + $0x130] sm:$0xff]   ;;  %v2756_v47 = vld [vmem:[%s3657_s4 + $0x158] sm:$0xff]  }
 0x2c5   : > { %v1318_v49 = vpop.f32.mrf.mxu0 }
 0x2c7   : > { %v1320_v50 = vpop.f32.mrf.mxu0 }
 0x2c9   : > { %v1322_v51 = vpop.f32.mrf.mxu0 }
 0x2ca   : > { %v1367_v13 = vpack.c.bf16 %v1322_v51, %v1318_v49  ;;  %v2759_v49 = vld [vmem:[%s3657_s4 + $0x150] sm:$0xff]   ;;  %v2762_v51 = vld [vmem:[%s3657_s4 + $0x148] sm:$0xff]  }
 0x2cb   : > { %v1324_v52 = vpop.f32.mrf.mxu0 }
 0x2cc   : > { %v1368_v56 = vpack.c.bf16 %v1324_v52, %v1320_v50  ;;  %v2760_v50 = vld [vmem:[%s3657_s4 + $0x110] sm:$0xff]   ;;  %v2763_v52 = vld [vmem:[%s3657_s4 + $0x108] sm:$0xff]  }
 0x2cd   : > { %v1328_v53 = vpop.f32.mrf.mxu0 }
 0x2cf   : > { %v1330_v54 = vpop.f32.mrf.mxu0 }
 0x2d1   : > { %v1332_v57 = vpop.f32.mrf.mxu0 }
 0x2d2   : > { %v1369_v4 = vpack.c.bf16 %v1332_v57, %v1328_v53  ;;  %v2765_v53 = vld [vmem:[%s3657_s4 + $0x140] sm:$0xff]  }
 0x2d3   : > { %v1334_v58 = vpop.f32.mrf.mxu0 }
 0x2d4   : > { %v1370_v17 = vpack.c.bf16 %v1334_v58, %v1330_v54  ;;  %v2766_v54 = vld [vmem:[%s3657_s4 + $0x100] sm:$0xff]  }
 0x2d5   : > { %v1338_v59 = vpop.f32.mrf.mxu0 }
 0x2d7   : > { %v1340_v60 = vpop.f32.mrf.mxu0 }
 0x2d9   : > { %v1342_v61 = vpop.f32.mrf.mxu0 }
 0x2da   : > { %v1371_v9 = vpack.c.bf16 %v1342_v61, %v1338_v59 }
 0x2db   : > { %v1344_v62 = vpop.f32.mrf.mxu0 }
 0x2dc   : > { %v1372_v10 = vpack.c.bf16 %v1344_v62, %v1340_v60 }
 0x2dd   : > { %v1348_v63 = vpop.f32.mrf.mxu0 }
 0x2df   : > { %v1350_v0 = vpop.f32.mrf.mxu0 }
 0x2e1   : > { %v1352_v1 = vpop.f32.mrf.mxu0 }
 0x2e2   : > { %v1373_v7 = vpack.c.bf16 %v1352_v1, %v1348_v63  ;;  %v3728_v1 = vld [vmem:[#allocation7_spill] sm:$0xff] }
 0x2e3   : > { %v1354_v2 = vpop.f32.mrf.mxu0 }
 0x2e4   : > { %v1374_v6 = vpack.c.bf16 %v1354_v2, %v1350_v0  ;;  %v3727_v0 = vld [vmem:[#allocation8_spill] sm:$0xff] }
 0x2e5   : > { %v2606_v57 = vpop.f32.mrf.mxu0 }
 0x2e6   : > { %1381 = vmatprep.subr.bf16.mxu1 %v1374_v6 }
 0x2e7   : > { %1382 = vmatpush1.bf16.msra.mxu1 %v1373_v7  ;;  %v2607_v58 = vpop.f32.mrf.mxu0  ;;  %v1155_v7 = vpop.f32.mrf.mxu1 }
 0x2e8   : > { %1383 = vmatprep.subr.bf16.mxu1 %v1372_v10  ;;  %v3520_v59 = vadd.f32 %v2607_v58, %v2606_v57 }
 0x2e9   : > { %v2609_v60 = vpop.f32.mrf.mxu0  ;;  %v1157_v10 = vpop.f32.mrf.mxu1 }
 0x2eb   : > { %1384 = vmatpush1.bf16.msra.mxu1 %v1371_v9  ;;  %v2610_v61 = vpop.f32.mrf.mxu0  ;;  %v1159_v9 = vpop.f32.mrf.mxu1 }
 0x2ec   : > { %1385 = vmatprep.subr.bf16.mxu1 %v1370_v17 }
 0x2ed   : > { %v1161_v17 = vpop.f32.mrf.mxu1 }
 0x2ef   : > { %1386 = vmatpush1.bf16.msra.mxu1 %v1369_v4  ;;  %v1156_v4 = vadd.f32 %v1155_v7, %v3305_v5 }
 0x2f0   : > { %1387 = vmatprep.subr.bf16.mxu1 %v1368_v56 }
 0x2f3   : > { %1388 = vmatpush1.bf16.msra.mxu1 %v1367_v13  ;;  %v1158_v13 = vadd.f32 %v1157_v10, %v3311_v11 }
 0x2f4   : > { %1389 = vmatprep.subr.bf16.mxu1 %v1366_v14 }
 0x2f7   : > { %1390 = vmatpush1.bf16.msra.mxu1 %v1365_v21 }
 0x2f8   : > { %1391 = vmatprep.subr.bf16.mxu1 %v1364_v26 }
 0x2fb   : > { %1392 = vmatpush1.bf16.msra.mxu1 %v1363_v31 }
 0x2fc   : > { %1393 = vmatprep.subr.bf16.mxu1 %v1362_v3  ;;  %v2736_v3 = vld [vmem:[%s3657_s4 + $0x8] sm:$0xff]  }
 0x2ff   : > { %1394 = vmatpush1.bf16.msra.mxu1 %v1361_v33  ;;  %v2732_v33 = vld [vmem:[%s3657_s4 + $0x10] sm:$0xff]  }
 0x300   : > { %1395 = vmatprep.subr.bf16.mxu1 %v1360_v24  ;;  %v2727_v24 = vld [vmem:[%s3657_s4 + $0x58] sm:$0xff]  }
 0x303   : > { %1396 = vmatpush1.bf16.msra.mxu1 %v1359_v22  ;;  %v2723_v22 = vld [vmem:[%s3657_s4 + $0x60] sm:$0xff]  }
 0x304   : > { %2568 = vmatprep.subr.bf16.mxu1 %v2713_v30 }
 0x305   : > { %v3522_v62 = vpop.f32.mrf.mxu0 }
 0x306   : > { %1414 = vmatmul.mubr.bf16.vlgmr.msra.gmra.mxu1 %v2712_v29 }
 0x307   : > { %2569 = vmatpush3.bf16.msra.mxu1 %v2714_v25  ;;  %1966 = vmatprep.mubr.bf16.mxu1 %v3322_v32  ;;  %v2724_v32 = vld [vmem:[%s3657_s4 + $0x20] sm:$0xff]   ;;  %v2661_v63 = vpop.f32.mrf.mxu0 }
 0x308   : > { %2570 = vmatprep.subr.bf16.mxu1 %v2715_v16 }
 0x309   : > { %v2091_v2 = vpop.f32.mrf.mxu0 }
 0x30b   : > { %2571 = vmatpush3.bf16.msra.mxu1 %v2716_v23  ;;  %v2662_v6 = vpop.f32.mrf.mxu0 }
 0x30c   : > { %2572 = vmatprep.subr.bf16.mxu1 %v2719_v12 }
 0x30f   : > { %2573 = vmatpush3.bf16.msra.mxu1 %v2720_v20 }
 0x310   : > { %2574 = vmatprep.subr.bf16.mxu1 %v2723_v22 }
 0x313   : > { %2575 = vmatpush3.bf16.msra.mxu1 %v2724_v32 }
 0x314   : > { %2576 = vmatprep.subr.bf16.mxu1 %v2727_v24  ;;  %v1160_v24 = vadd.f32 %v1159_v9, %v3316_v19 }
 0x317   : > { %2577 = vmatpush3.bf16.msra.mxu1 %v2728_v27 }
 0x318   : > { %2578 = vmatprep.subr.bf16.mxu1 %v2731_v28 }
 0x31b   : > { %2579 = vmatpush3.bf16.msra.mxu1 %v2732_v33  ;;  %v1162_v33 = vadd.f32 %v1161_v17, %v3324_v18 }
 0x31c   : > { %2580 = vmatprep.subr.bf16.mxu1 %v2735_v34 }
 0x31f   : > { %2581 = vmatpush3.bf16.msra.mxu1 %v2736_v3 }
 0x320   : > { %2582 = vmatprep.subr.bf16.mxu1 %v2739_v35 }
 0x323   : > { %2583 = vmatpush3.bf16.msra.mxu1 %v2740_v36 }
 0x324   : > { %2612 = vmatprep.subr.bf16.mxu1 %v2743_v38 }
 0x326   : > { %1967 = vmatmul.mubr.bf16.vlgmr.msra.gmra.mxu1 %v3327_v55  ;;  %v2753_v55 = vld [vmem:[%s3657_s4 + $0x160] sm:$0xff]  }
 0x327   : > { %2613 = vmatpush3.bf16.msra.mxu1 %v2744_v39  ;;  %2046 = vmatprep.mubr.bf16.mxu1 %v1587_v40  ;;  %v1541_v39 = vld [vmem:[%s3658_s5] sm:$0x1] }
 0x328   : > { %2614 = vmatprep.subr.bf16.mxu1 %v2747_v41 }
 0x32b   : > { %2615 = vmatpush3.bf16.msra.mxu1 %v2748_v42 }
 0x32c   : > { %2616 = vmatprep.subr.bf16.mxu1 %v2750_v43 }
 0x32f   : > { %2617 = vmatpush3.bf16.msra.mxu1 %v2751_v44 }
 0x330   : > { %2618 = vmatprep.subr.bf16.mxu1 %v2753_v55 }
 0x333   : > { %2619 = vmatpush3.bf16.msra.mxu1 %v2754_v45 }
 0x334   : > { %2620 = vmatprep.subr.bf16.mxu1 %v2756_v47 }
 0x337   : > { %2621 = vmatpush3.bf16.msra.mxu1 %v2757_v48 }
 0x338   : > { %2622 = vmatprep.subr.bf16.mxu1 %v2759_v49 }
 0x33b   : > { %2623 = vmatpush3.bf16.msra.mxu1 %v2760_v50 }
 0x33c   : > { %2624 = vmatprep.subr.bf16.mxu1 %v2762_v51 }
 0x33f   : > { %2625 = vmatpush3.bf16.msra.mxu1 %v2763_v52 }
 0x340   : > { %2626 = vmatprep.subr.bf16.mxu1 %v2765_v53 }
 0x343   : > { %2627 = vmatpush3.bf16.msra.mxu1 %v2766_v54 }
 0x344   : > { %2563 = vmatprep.subr.msk.mxu1 %vm2099_vm13, %v3727_v0 }
 0x346   : > { %2047 = vmatmul.mubr.bf16.vlgmr.msra.gmra.mxu1 %v3396_v46  ;;  %v3529_v46 = vld [vmem:[%s3659_s6 + $0x8] sm:$0xff] }
 0x347   : > { %2170 = vmatprep.mubr.f32.mxu1 %v2793_v15  ;;  %2564 = vmatpush1.msk.msra.mxu1 %vm2099_vm13, %v3728_v1  ;;  %v3535_v15 = vld [vmem:[%s3659_s6] sm:$0xff] }
 0x348   : > { %2136 = vmatprep.subr.mxu1 %v3529_v46 }
 0x349   : > { %2137 = vmatpush1.msra.mxu1 %v3535_v15 }
 0x3c6   : > { %v1415_v56 = vpop.f32.mrf.mxu1 }
 0x3c7   : > { %v3540_v14 = vadd.f32 %v1415_v56, %v1156_v4 }
 0x3c8   : > { %v1417_v21 = vpop.f32.mrf.mxu1 }
 0x3c9   : > { %v3542_v26 = vadd.f32 %v1417_v21, %v1158_v13  ;;  %2177 = vrot.lane.b32.xlu0 %v3540_v14, %s2784_s17  ;;  %v2189_v31 = vrot.slane %v3540_v14, 1  ;;  %v2215_v11 = vrot.slane %v3540_v14, 2  ;;  %v2241_v29 = vrot.slane %v3540_v14, 3 }
 0x3ca   : > { %v2277_v16 = vrot.slane %v3540_v14, 5  ;;  %v2303_v12 = vrot.slane %v3540_v14, 6  ;;  %v1419_v22 = vpop.f32.mrf.mxu1  ;;  %v2329_v32 = vrot.slane %v3540_v14, 7 }
 0x3cb   : > { %2179 = vrot.lane.b32.xlu1 %v3542_v26, %s2784_s17  ;;  %v2190_v5 = vrot.slane %v3542_v26, 1  ;;  %v2216_v30 = vrot.slane %v3542_v26, 2  ;;  %v2242_v25 = vrot.slane %v3542_v26, 3  ;;  %v2278_v23 = vrot.slane %v3542_v26, 5 }
 0x3cc   : > { %v2304_v20 = vrot.slane %v3542_v26, 6  ;;  %v2330_v27 = vrot.slane %v3542_v26, 7  ;;  %v1421_v28 = vpop.f32.mrf.mxu1  ;;  %v1426_v34 = vadd.f32 %v1419_v22, %v1160_v24 }
 0x3cd   : > { %2193 = vrot.lane.b32.xlu0 %v2189_v31, %s2783_s16  ;;  %v1427_v3 = vadd.f32 %v1421_v28, %v1162_v33 }
 0x3cf   : > { %2195 = vrot.lane.b32.xlu1 %v2190_v5, %s2783_s16 }
 0x3d1   : > { %2219 = vrot.lane.b32.xlu0 %v2215_v11, %s2785_s18 }
 0x3d3   : > { %2221 = vrot.lane.b32.xlu1 %v2216_v30, %s2785_s18  ;;  %s3582_s18 = sld [smem:[#allocation3]] }
 0x3d5   : > { %2245 = vrot.lane.b32.xlu0 %v2241_v29, %s2786_s19 }
 0x3d7   : > { %2247 = vrot.lane.b32.xlu1 %v2242_v25, %s2786_s19 }
 0x3d9   : > { %2281 = vrot.lane.b32.xlu0 %v2277_v16, %s2787_s20  ;;  %v2095_v31 = vstv %s3582_s18 }
 0x3db   : > { %2283 = vrot.lane.b32.xlu1 %v2278_v23, %s2787_s20  ;;  %v2267_v23 = vmul.f32 %v3535_v15, %v3540_v14 }
 0x3dd   : > { %2307 = vrot.lane.b32.xlu0 %v2303_v12, %s2788_s21  ;;  %v2268_v12 = vmul.f32 %v3529_v46, %v3542_v26 }
 0x3df   : > { %2309 = vrot.lane.b32.xlu1 %v2304_v20, %s2788_s21 }
 0x3e1   : > { %2333 = vrot.lane.b32.xlu0 %v2329_v32, %s2789_s22 }
 0x3e3   : > { %2335 = vrot.lane.b32.xlu1 %v2330_v27, %s2789_s22 }
 0x3e5   : > { %2355 = vrot.lane.b32.xlu0 %v1426_v34, %s2790_s23 }
 0x3e6   : > { %v2584_v35 = vpop.f32.mrf.mxu1 }
 0x3e7   : > { %2357 = vrot.lane.b32.xlu1 %v1427_v3, %s2790_s23 }
 0x3e8   : > { %v2585_v36 = vpop.f32.mrf.mxu1 }
 0x3e9   : > { %v2586_v19 = vadd.f32 %v2585_v36, %v2584_v35 }
 0x3ea   : > { %v2587_v37 = vpop.f32.mrf.mxu1 }
 0x3eb   : > { %v1969_v40 = vadd.f32 %v2586_v19, %v1541_v39 }
 0x3ec   : > { %v2588_v38 = vpop.f32.mrf.mxu1 }
 0x3ed   : > { %v2009_v42 = vadd.f32 %v3520_v59, %v1969_v40 }
 0x406   : > { %v2628_v41 = vpop.f32.mrf.mxu1 }
 0x408   : > { %v2629_v18 = vpop.f32.mrf.mxu1 }
 0x409   : > { %v2630_v43 = vadd.f32 %v2629_v18, %v2628_v41 }
 0x40a   : > { %v2631_v44 = vpop.f32.mrf.mxu1 }
 0x40b   : > { %v2049_v55 = vadd.f32 %v2630_v43, %v2009_v42 }
 0x40c   : > { %v2632_v45 = vpop.f32.mrf.mxu1 }
 0x40d   : > { %v2089_v47 = vadd.f32 %v3522_v62, %v2049_v55 }
 0x40f   : > { %2565 = vmatmul.mubr.msk.f32.vlgmr.msra.gmra.mxu1 %vm689_vm11, %v2089_v47 }
 0x43b   : > { %v2178_v49 = vpop.permute.xlu0 %2177 }
 0x43d   : > { %v2180_v48 = vpop.permute.xlu1 %2179 }
 0x43e   : > { %v2182_v10 = vsel %vm342_vm2, %v2180_v48, %v2178_v49  ;;  %v2181_v56 = vsel %vm342_vm2, %v2178_v49, %v2180_v48 }
 0x43f   : > { %v2194_v51 = vpop.permute.xlu0 %2193  ;;  %v2183_v29 = vmul.f32 %v3535_v15, %v2182_v10  ;;  %v2184_v20 = vmul.f32 %v3529_v46, %v2181_v56 }
 0x441   : > { %v2196_v50 = vpop.permute.xlu1 %2195 }
 0x442   : > { %v2197_v61 = vsel %vm375_vm1, %v2194_v51, %v2196_v50  ;;  %v2198_v62 = vsel %vm375_vm1, %v2196_v50, %v2194_v51 }
 0x443   : > { %v2220_v53 = vpop.permute.xlu0 %2219  ;;  %v2201_v0 = vrot.slane %v2198_v62, 7  ;;  %v2202_v1 = vrot.slane %v2197_v61, 7 }
 0x445   : > { %v2222_v52 = vpop.permute.xlu1 %2221  ;;  %v2205_v5 = vmul.f32 %v3535_v15, %v2201_v0  ;;  %v2206_v11 = vmul.f32 %v3529_v46, %v2202_v1  ;;  %v2272_v0 = vrot.slane %v2268_v12, 4 }
 0x446   : > { %v2224_v63 = vsel %vm411_vm3, %v2222_v52, %v2220_v53  ;;  %v2223_v2 = vsel %vm411_vm3, %v2220_v53, %v2222_v52 }
 0x447   : > { %v2246_v57 = vpop.permute.xlu0 %2245  ;;  %v2227_v9 = vrot.slane %v2224_v63, 6  ;;  %v2228_v13 = vrot.slane %v2223_v2, 6  ;;  %v2209_v35 = vrot.slane %v2205_v5, 1  ;;  %v2210_v26 = vrot.slane %v2206_v11, 1 }
 0x449   : > { %v2248_v54 = vpop.permute.xlu1 %2247  ;;  %v2231_v22 = vmul.f32 %v3535_v15, %v2227_v9  ;;  %v2232_v28 = vmul.f32 %v3529_v46, %v2228_v13 }
 0x44a   : > { %v2250_v6 = vsel %vm445_vm4, %v2248_v54, %v2246_v57  ;;  %v2249_v17 = vsel %vm445_vm4, %v2246_v57, %v2248_v54  ;;  %v2271_v57 = vrot.slane %v2267_v23, 4 }
 0x44b   : > { %v2282_v59 = vpop.permute.xlu0 %2281  ;;  %v2253_v21 = vrot.slane %v2250_v6, 5  ;;  %v2254_v25 = vrot.slane %v2249_v17, 5  ;;  %v2235_v18 = vrot.slane %v2231_v22, 2  ;;  %v2236_v55 = vrot.slane %v2232_v28, 2 }
 0x44d   : > { %v2284_v58 = vpop.permute.xlu1 %2283  ;;  %v2257_v33 = vmul.f32 %v3535_v15, %v2253_v21  ;;  %v2258_v19 = vmul.f32 %v3529_v46, %v2254_v25 }
 0x44e   : > { %v2285_v30 = vsel %vm499_vm5, %v2282_v59, %v2284_v58  ;;  %v2286_v32 = vsel %vm499_vm5, %v2284_v58, %v2282_v59 }
 0x44f   : > { %v2308_v4 = vpop.permute.xlu0 %2307  ;;  %v2289_v34 = vrot.slane %v2285_v30, 3  ;;  %v2290_v39 = vrot.slane %v2286_v32, 3  ;;  %v2261_v45 = vrot.slane %v2257_v33, 3  ;;  %v2262_v53 = vrot.slane %v2258_v19, 3 }
 0x451   : > { %v2310_v7 = vpop.permute.xlu1 %2309  ;;  %v2293_v47 = vmul.f32 %v3535_v15, %v2289_v34  ;;  %v2294_v54 = vmul.f32 %v3529_v46, %v2290_v39 }
 0x452   : > { %v2311_v14 = vsel %vm533_vm6, %v2308_v4, %v2310_v7  ;;  %v2312_v40 = vsel %vm533_vm6, %v2310_v7, %v2308_v4 }
 0x453   : > { %v2334_v36 = vpop.permute.xlu0 %2333  ;;  %v2315_v42 = vrot.slane %v2311_v14, 2  ;;  %v2316_v49 = vrot.slane %v2312_v40, 2  ;;  %v2297_v63 = vrot.slane %v2293_v47, 5  ;;  %v2298_v10 = vrot.slane %v2294_v54, 5 }
 0x455   : > { %v2336_v24 = vpop.permute.xlu1 %2335  ;;  %v2319_v58 = vmul.f32 %v3535_v15, %v2315_v42  ;;  %v2320_v1 = vmul.f32 %v3529_v46, %v2316_v49 }
 0x456   : > { %v2337_v41 = vsel %vm567_vm7, %v2334_v36, %v2336_v24  ;;  %v2338_v48 = vsel %vm567_vm7, %v2336_v24, %v2334_v36 }
 0x457   : > { %v2341_v50 = vrot.slane %v2337_v41, 1  ;;  %v2342_v59 = vrot.slane %v2338_v48, 1  ;;  %v2323_v9 = vrot.slane %v2319_v58, 6  ;;  %v2324_v21 = vrot.slane %v2320_v1, 6  ;;  %v2356_v5 = vpop.permute.xlu0 %2355 }
 0x459   : > { %v2345_v2 = vmul.f32 %v3535_v15, %v2341_v50  ;;  %v2346_v17 = vmul.f32 %v3529_v46, %v2342_v59  ;;  %v2358_v4 = vpop.permute.xlu1 %2357  ;;  %v2772_v46 = vld [vmem:[%s3659_s6 + $0x10] sm:$0x1] }
 0x45a   : > { %v2360_v15 = vsel %vm601_vm8, %v2358_v4, %v2356_v5 }
 0x45b   : > { %v2350_v25 = vrot.slane %v2346_v17, 7 }
 0x4cf   : > { %v2172_v16 = vpop.f32.mrf.mxu1 }
 0x4d0   : > { %v2173_v27 = vadd.f32 %v2172_v16, %v2095_v31 }
 0x4d1   : > { %v2174_v3 = vpop.f32.mrf.mxu1 }
 0x4d2   : > { %v2185_v37 = vadd.f32 %v2183_v29, %v2173_v27  ;;  %v2175_v38 = vadd.f32 %v2174_v3, %v2095_v31  ;;  %v2349_v31 = vrot.slane %v2345_v2, 7  ;;  %v2359_v29 = vsel %vm601_vm8, %v2356_v5, %v2358_v4 }
 0x4d3   : > { %v2361_v12 = vmul.f32 %v2772_v46, %v2359_v29 }
 0x4d4   : > { %v2213_v43 = vadd.f32 %v2209_v35, %v2185_v37  ;;  %v2186_v44 = vadd.f32 %v2184_v20, %v2175_v38  ;;  %v2773_v20 = vld [vmem:[%s3659_s6 + $0x18] sm:$0x1] }
 0x4d5   : > { %v2362_v22 = vmul.f32 %v2773_v20, %v2360_v15 }
 0x4d6   : > { %v2239_v51 = vadd.f32 %v2235_v18, %v2213_v43  ;;  %v2214_v52 = vadd.f32 %v2210_v26, %v2186_v44 }
 0x4d8   : > { %v2265_v61 = vadd.f32 %v2261_v45, %v2239_v51  ;;  %v2240_v62 = vadd.f32 %v2236_v55, %v2214_v52 }
 0x4da   : > { %v2275_v6 = vadd.f32 %v2271_v57, %v2265_v61  ;;  %v2266_v7 = vadd.f32 %v2262_v53, %v2240_v62 }
 0x4dc   : > { %v2301_v56 = vadd.f32 %v2297_v63, %v2275_v6  ;;  %v2276_v13 = vadd.f32 %v2272_v0, %v2266_v7 }
 0x4de   : > { %v2327_v11 = vadd.f32 %v2323_v9, %v2301_v56  ;;  %v2302_v30 = vadd.f32 %v2298_v10, %v2276_v13 }
 0x4e0   : > { %v2353_v16 = vadd.f32 %v2349_v31, %v2327_v11  ;;  %v2328_v23 = vadd.f32 %v2324_v21, %v2302_v30 }
 0x4e2   : > { %v2354_v32 = vadd.f32 %v2350_v25, %v2328_v23  ;;  %v2363_v24 = vadd.f32 %v2361_v12, %v2353_v16 }
 0x4e4   : > { %v2364_v27 = vadd.f32 %v2362_v22, %v2354_v32 }
 0x4e6   : > { %v2367_v28 = vcombine.low %v2363_v24, %v2364_v27 }
 0x4e8   : > { %v2374_v60 = vrot.slane %v2367_v28, %v3726_v8 }
 0x4ea   : > { %v2381_v33 = vrot.slane %v2374_v60, %v3726_v8 }
 0x4ec   : > { %2383 = vst.msk [vmem:[%s318_s15] sm:$0x3] %vm2877_vm0, %v2381_v33 }
 0x4ed PF: > { %s19_s29 = sadd.s32 1, %s2780_s29  }
 0x4ee   : > { %p16_p4 = scmp.ge.s32.totalorder %s19_s29, 4  }
 0x4f0   :  { %18 = sbr.rel (!%p16_p4) target bundleno = 2 (0x2), region = 93 }

</bundles_post_ra>
